<compile_context>
chip_gen: v7x
topology: tpu7x:2x2x1
jax: 0.10.0
libtpu: 0.0.40
codegen_flags: <defaults>
</compile_context>

<pallas_src>
import functools

import numpy as np
import jax
import jax.numpy as jnp
from jax import lax
from jax.experimental import pallas as pl
from jax.experimental.pallas import tpu as pltpu

KSIZE = 7
STRIDE1 = 4
STRIDE2 = 1
SOFTMAX_SCALE = 10.0
NCE = 4                                   # number of CE branches
_VMEM_LIMIT = 32 * 1024 * 1024            # <= scoped/physical VMEM on v5e/v6e/v7x


def _round_up(n, m):
    return ((n + m - 1) // m) * m


def _pick_div_tile(n, cap, mult=8):
    """Largest tile <= cap dividing n that is a multiple of `mult` (else n)."""
    if n <= cap:
        return n
    for t in range(cap - cap % mult, mult - 1, -mult):
        if n % t == 0:
            return t
    return n  # TODO(synk): pad + in-kernel masking for awkward L2 sizes.


# ----------------------------------------------------------------------------
# Kernel 1: 1x1 convolution == channel-mixing matmul (optional fused residual).
# bf16 HBM operands, f32 accumulation, lane-dense 128-padded HW tiles.
# ----------------------------------------------------------------------------
def _pw_kernel(x_ref, w_ref, b_ref, o_ref):
    y = jnp.dot(w_ref[...], x_ref[0], preferred_element_type=jnp.float32)
    o_ref[0] = (y + b_ref[...]).astype(o_ref.dtype)


def _pw_res_kernel(x_ref, w_ref, b_ref, r_ref, o_ref):
    y = jnp.dot(w_ref[...], x_ref[0], preferred_element_type=jnp.float32)
    o_ref[0] = (y + b_ref[...] + r_ref[0]).astype(o_ref.dtype)


def pointwise_conv(x_bchw, w, b=None, residual=None, *, max_lanes=2048):
    """1x1 conv in NCHW (+ optional bias and fused residual add)."""
    B, Cin, H, W = x_bchw.shape
    Cout = w.shape[0]
    HW = H * W
    if HW <= max_lanes:
        t = _round_up(HW, 128)
        HWp = t
    else:
        t = max_lanes                       # multiple of 128 by construction
        HWp = _round_up(HW, t)
    x2 = x_bchw.reshape(B, Cin, HW).astype(jnp.bfloat16)   # bf16 HBM operand
    x2 = jnp.pad(x2, ((0, 0), (0, 0), (0, HWp - HW)))
    wb = w.astype(jnp.bfloat16)
    if b is None:
        b = jnp.zeros((Cout,), jnp.float32)
    args = [x2, wb, b.astype(jnp.float32).reshape(Cout, 1)]
    in_specs = [
        pl.BlockSpec((1, Cin, t), lambda i, j: (i, 0, j)),
        pl.BlockSpec((Cout, Cin), lambda i, j: (0, 0)),
        pl.BlockSpec((Cout, 1), lambda i, j: (0, 0)),
    ]
    if residual is None:
        kernel = _pw_kernel
    else:
        r2 = residual.reshape(B, Cout, HW).astype(jnp.float32)
        r2 = jnp.pad(r2, ((0, 0), (0, 0), (0, HWp - HW)))
        args.append(r2)
        in_specs.append(pl.BlockSpec((1, Cout, t), lambda i, j: (i, 0, j)))
        kernel = _pw_res_kernel
    out = pl.pallas_call(
        kernel,
        out_shape=jax.ShapeDtypeStruct((B, Cout, HWp), jnp.float32),
        grid=(B, HWp // t),
        in_specs=in_specs,
        out_specs=pl.BlockSpec((1, Cout, t), lambda i, j: (i, 0, j)),
        compiler_params=pltpu.CompilerParams(
            dimension_semantics=("parallel", "parallel"),
            vmem_limit_bytes=_VMEM_LIMIT),
    )(*args)
    return out[:, :, :HW].reshape(B, Cout, H, W)


# ----------------------------------------------------------------------------
# 3x3 conv (padding=1): im2col glue + one deep-K MXU matmul (contraction 9*Cin)
# through the tiled pointwise kernel.  All four CE 'g' convs are fused (wide Cout).
# ----------------------------------------------------------------------------
def conv3x3(x_bchw, w_flat, b):
    B, Cin, H, W = x_bchw.shape
    xp = jnp.pad(x_bchw, ((0, 0), (0, 0), (1, 1), (1, 1)))
    cols = [xp[:, :, i:i + H, j:j + W] for i in range(3) for j in range(3)]
    x9 = jnp.concatenate(cols, axis=1)      # (B, 9*Cin, H, W), tap-major features
    return pointwise_conv(x9, w_flat, b)


# ----------------------------------------------------------------------------
# Kernel 2: batched patch Linear + ReLU (fc1 / fc2), bf16 in, bf16 out, f32 acc.
# ----------------------------------------------------------------------------
def _linrelu_kernel(p_ref, w_ref, b_ref, o_ref):
    y = jnp.dot(p_ref[0, 0], w_ref[0], preferred_element_type=jnp.float32)
    y = jnp.maximum(y + b_ref[0], 0.0)
    o_ref[0, 0] = y.astype(o_ref.dtype)


def patch_linear_relu(p, wT, bias, *, tile_l):
    # p: (NCE, B, L, Fp) bf16 ; wT: (NCE, Fp, Cfp) bf16 ; bias: (NCE, 1, Cfp) f32
    E, B, L, Fp = p.shape
    Cfp = wT.shape[2]
    return pl.pallas_call(
        _linrelu_kernel,
        out_shape=jax.ShapeDtypeStruct((E, B, L, Cfp), jnp.bfloat16),
        grid=(E, B, L // tile_l),
        in_specs=[
            pl.BlockSpec((1, 1, tile_l, Fp), lambda e, b, l: (e, b, l, 0)),
            pl.BlockSpec((1, Fp, Cfp), lambda e, b, l: (e, 0, 0)),
            pl.BlockSpec((1, 1, Cfp), lambda e, b, l: (e, 0, 0)),
        ],
        out_specs=pl.BlockSpec((1, 1, tile_l, Cfp), lambda e, b, l: (e, b, l, 0)),
        compiler_params=pltpu.CompilerParams(
            dimension_semantics=("parallel", "parallel", "parallel"),
            vmem_limit_bytes=_VMEM_LIMIT),
    )(p, wT, bias)


# ----------------------------------------------------------------------------
# Kernel 3: CE core — score matmul, soft-threshold mask, masked softmax and
# patch aggregation, streamed flash-attention style over the L2 axis.
# Grid: (B, NCE, L2-tiles); running max / denom / accumulator in VMEM scratch.
# L1 stays untiled on purpose: it is small, and tiling it would re-stream the
# dominant pv/xi DMA traffic once per L1 block.
# ----------------------------------------------------------------------------
def _ce_core_kernel(wi_ref, shift_ref, xi_ref, pv_ref, o_ref,
                    m_s, l_s, acc_s, *, sm_scale):
    k = pl.program_id(2)

    @pl.when(k == 0)
    def _():
        m_s[...] = jnp.full_like(m_s, -1e30)
        l_s[...] = jnp.zeros_like(l_s)
        acc_s[...] = jnp.zeros_like(acc_s)

    wi = wi_ref[0, 0]                        # (L1, Cfp) bf16 (resident)
    xi = xi_ref[0, 0]                        # (tk, Cfp) bf16 (streamed)
    # score tile without materializing xi.T (contract the shared Cf axis)
    score = lax.dot_general(wi, xi, (((1,), (1,)), ((), ())),
                            preferred_element_type=jnp.float32)   # (L1, tk)

    # soft-threshold mask: shift = mean*thr - sbias (precomputed, exact mean)
    mask = jnp.maximum(score - shift_ref[0, 0], 0.0)
    logits = score * mask * sm_scale
    mask_b = (mask > 0.0).astype(jnp.float32)

    # online softmax over L2
    m_prev = m_s[...]
    m_new = jnp.maximum(m_prev, jnp.max(logits, axis=1, keepdims=True))
    alpha = jnp.exp(m_prev - m_new)
    p = jnp.exp(logits - m_new)
    l_s[...] = alpha * l_s[...] + jnp.sum(p, axis=1, keepdims=True)
    acc_s[...] = alpha * acc_s[...] + jnp.dot(
        (p * mask_b).astype(jnp.bfloat16), pv_ref[0, 0],
        preferred_element_type=jnp.float32)
    m_s[...] = m_new

    @pl.when(k == pl.num_programs(2) - 1)
    def _():
        o_ref[0, 0] = (acc_s[...] * pl.reciprocal(l_s[...], approx=True)
                       ).astype(o_ref.dtype)


def ce_core(wi, shift, xi, pv, *, sm_scale, tk):
    # wi: (NCE,B,L1,Cfp) bf16 ; shift: (NCE,B,L1,1) f32
    # xi: (NCE,B,L2,Cfp) bf16 ; pv: (NCE,B,L2,Fp) bf16
    E, B, L1, Cfp = wi.shape
    L2 = xi.shape[2]
    Fp = pv.shape[3]
    kernel = functools.partial(_ce_core_kernel, sm_scale=sm_scale)
    return pl.pallas_call(
        kernel,
        out_shape=jax.ShapeDtypeStruct((B, E, L1, Fp), jnp.float32),
        grid=(B, E, L2 // tk),
        in_specs=[
            pl.BlockSpec((1, 1, L1, Cfp), lambda b, e, k: (e, b, 0, 0)),
            pl.BlockSpec((1, 1, L1, 1), lambda b, e, k: (e, b, 0, 0)),
            pl.BlockSpec((1, 1, tk, Cfp), lambda b, e, k: (e, b, k, 0)),
            pl.BlockSpec((1, 1, tk, Fp), lambda b, e, k: (e, b, k, 0)),
        ],
        out_specs=pl.BlockSpec((1, 1, L1, Fp), lambda b, e, k: (b, e, 0, 0)),
        scratch_shapes=[
            pltpu.VMEM((L1, 1), jnp.float32),   # running max
            pltpu.VMEM((L1, 1), jnp.float32),   # running denominator
            pltpu.VMEM((L1, Fp), jnp.float32),  # output accumulator
        ],
        compiler_params=pltpu.CompilerParams(
            dimension_semantics=("parallel", "parallel", "arbitrary"),
            vmem_limit_bytes=_VMEM_LIMIT),
    )(wi, shift, xi, pv)


# ----------------------------------------------------------------------------
# Plain-JAX glue: resizes, unfold / fold (pure data movement).
# ----------------------------------------------------------------------------
def avg_pool_2x2(x):
    # bilinear 0.5x (align_corners=False) == exact 2x2 mean
    B, C, H, W = x.shape
    return x.reshape(B, C, H // 2, 2, W // 2, 2).mean(axis=(3, 5))


def upsample_2x_bilinear(x):
    # TODO(synk): bilinear 2x upsample (align_corners=False) kept as JAX gather glue.
    def interp_axis(a, axis):
        n = a.shape[axis]
        i = jnp.arange(2 * n, dtype=jnp.float32)
        src = jnp.maximum((i + 0.5) / 2.0 - 0.5, 0.0)
        lo = jnp.floor(src).astype(jnp.int32)
        frac = src - lo.astype(jnp.float32)
        hi = jnp.minimum(lo + 1, n - 1)
        alo = jnp.take(a, lo, axis=axis)
        ahi = jnp.take(a, hi, axis=axis)
        shape = [1] * a.ndim
        shape[axis] = 2 * n
        return alo * (1.0 - frac.reshape(shape)) + ahi * frac.reshape(shape)

    return interp_axis(interp_axis(x, 2), 3)


def same_pad_2d(x, k, s):
    B, C, H, W = x.shape
    out_r, out_c = -(-H // s), -(-W // s)
    pr = max(0, (out_r - 1) * s + k - H)
    pc = max(0, (out_c - 1) * s + k - W)
    top, left = pr // 2, pc // 2
    xp = jnp.pad(x, ((0, 0), (0, 0), (top, pr - top), (left, pc - left)))
    return xp, (left, pc - left, top, pr - top)


def extract_patches(x, k, s):
    # TODO(synk): torch.nn.Unfold ('same' padding) as plain-JAX slicing glue.
    xp, _ = same_pad_2d(x, k, s)
    B, C, Hp, Wp = xp.shape
    nr, nc = (Hp - k) // s + 1, (Wp - k) // s + 1
    cols = []
    for i in range(k):
        for j in range(k):
            cols.append(xp[:, :, i:i + (nr - 1) * s + 1:s, j:j + (nc - 1) * s + 1:s])
    p = jnp.stack(cols, axis=2)                       # (B, C, k*k, nr, nc)
    p = p.reshape(B, C * k * k, nr * nc)              # (c, i, j) feature order
    return p.transpose(0, 2, 1), (nr, nc)             # (B, L, C*k*k)


def fold_patches_taps(patches, Hs, Ws, nr, nc, k, s, pad):
    """fold via k*k dilate+pad+sum taps (op count independent of image size)."""
    B, E, L1, C, _, _ = patches.shape
    p = patches.reshape(B, E, nr, nc, C, k, k).transpose(0, 1, 4, 2, 3, 5, 6)
    Hc, Wc = Hs + 2 * pad, Ws + 2 * pad
    hh, ww = (nr - 1) * s + 1, (nc - 1) * s + 1
    acc = jnp.zeros((B, E, C, Hc, Wc), patches.dtype)
    for i in range(k):
        for j in range(k):
            tap = p[..., i, j]                        # (B, E, C, nr, nc)
            d = jnp.pad(tap[..., :, None, :, None],
                        ((0, 0), (0, 0), (0, 0),
                         (0, 0), (0, s - 1), (0, 0), (0, s - 1)))
            d = d.reshape(B, E, C, nr * s, nc * s)[..., :hh, :ww]
            acc = acc + jnp.pad(
                d, ((0, 0), (0, 0), (0, 0),
                    (i, Hc - i - hh), (j, Wc - j - ww)))
    return acc[..., pad:pad + Hs, pad:pad + Ws]


def fold_inv_counts(Hs, Ws, k, s, pad):
    """Overlap-count normalization table, computed once as a numpy constant."""
    nr = (Hs + 2 * pad - k) // s + 1
    nc = (Ws + 2 * pad - k) // s + 1
    canvas = np.zeros((Hs + 2 * pad, Ws + 2 * pad), np.float32)
    for r in range(nr):
        for c in range(nc):
            canvas[r * s:r * s + k, c * s:c * s + k] += 1.0
    return jnp.asarray(1.0 / canvas[pad:pad + Hs, pad:pad + Ws])


# reference-only fold helpers (per-patch scatter loop, kept independent of the
# tap-based implementation used in the Pallas path)
def fold_patches_ref(patches, H, W, k, s, pad):
    nr = (H + 2 * pad - k) // s + 1
    nc = (W + 2 * pad - k) // s + 1
    lead = patches.shape[:-4]
    C = patches.shape[-3]
    canvas = jnp.zeros(lead + (C, H + 2 * pad, W + 2 * pad), patches.dtype)
    for r in range(nr):
        for c in range(nc):
            canvas = canvas.at[..., r * s:r * s + k, c * s:c * s + k].add(
                patches[..., r * nc + c, :, :, :])
    return canvas[..., pad:pad + H, pad:pad + W]


def fold_counts_ref(H, W, k, s, pad):
    nr = (H + 2 * pad - k) // s + 1
    nc = (W + 2 * pad - k) // s + 1
    canvas = jnp.zeros((H + 2 * pad, W + 2 * pad), jnp.float32)
    blk = jnp.ones((k, k), jnp.float32)
    for r in range(nr):
        for c in range(nc):
            canvas = canvas.at[r * s:r * s + k, c * s:c * s + k].add(blk)
    return canvas[pad:pad + H, pad:pad + W]


# ----------------------------------------------------------------------------
# Full BasicgrapBlock forward.
# ----------------------------------------------------------------------------
def basicgrap_forward(x, params):
    B, dim, H, W = x.shape
    cd = dim // 2                      # CE inter_channels
    k, s1 = KSIZE, STRIDE1
    F = cd * k * k
    Fp = _round_up(F, 128)

    # --- DownSample: bilinear 0.5x + 1x1 conv (no bias) ---
    res = pointwise_conv(avg_pool_2x2(x), params["down_w"])       # (B, 2*dim, Hs, Ws)
    Hs, Ws = H // 2, W // 2

    # --- the four CE branches share their input: g / theta convs fused ---
    b1_all = conv3x3(res, params["g_w_flat"], params["g_b"])      # (B, NCE*cd, Hs, Ws)
    b2_all = pointwise_conv(res, params["theta_w"], params["theta_b"])

    # --- patch extraction (data-movement glue) ---
    p28, (nr1, nc1) = extract_patches(b1_all, k, s1)              # (B, L1, NCE*F)
    px, _ = extract_patches(b1_all, k, STRIDE2)                   # (B, L2, NCE*F)
    pv, _ = extract_patches(b2_all, k, STRIDE2)                   # (B, L2, NCE*F)
    pb4, _ = extract_patches(res, k, s1)                          # (B, L1, 2*dim*k*k)
    L1, L2 = nr1 * nc1, Hs * Ws

    def split_pad_bf16(p, L):
        # split per-branch features, move branch axis to the grid front,
        # zero-pad F to a lane-dense multiple of 128, cast bf16 for HBM.
        p = p.reshape(B, L, NCE, F).transpose(2, 0, 1, 3)
        p = jnp.pad(p, ((0, 0), (0, 0), (0, 0), (0, Fp - F)))
        return p.astype(jnp.bfloat16)

    p28e = split_pad_bf16(p28, L1)
    pxe = split_pad_bf16(px, L2)
    pve = split_pad_bf16(pv, L2)

    # --- soft threshold / bias (tiny per-row scalars) in glue ---
    tb = jnp.einsum("blf,efo->eblo", pb4, params["tb_w"]) \
        + params["tb_b"][:, None, None, :]
    thr, sbias = tb[..., 0], tb[..., 1]                           # (NCE, B, L1)

    # --- fc1 / fc2 (Pallas Linear+ReLU, bf16 MXU, f32 acc) ---
    tk = _pick_div_tile(L2, 512)
    tl1 = _pick_div_tile(L1, 512)
    wi = patch_linear_relu(p28e, params["fc1_wT"], params["fc1_b"], tile_l=tl1)
    xi = patch_linear_relu(pxe, params["fc2_wT"], params["fc2_b"], tile_l=tk)

    # exact score row-mean in one pass: mean = (wi @ sum_L2(xi)) / L2
    colsum = jnp.sum(xi.astype(jnp.float32), axis=2)              # (NCE, B, Cfp)
    mean = jnp.einsum("eblc,ebc->ebl", wi.astype(jnp.float32), colsum) / L2
    shift = (mean * thr - sbias)[..., None].astype(jnp.float32)   # (NCE, B, L1, 1)

    # --- CE core (streamed over L2) ---
    agg = ce_core(wi, shift, xi, pve, sm_scale=SOFTMAX_SCALE, tk=tk)
    agg = agg[..., :F]                                            # drop F padding

    # --- fold + overlap normalization ---
    pad_fold = (k - 1) // 2
    patches = agg.reshape(B, NCE, L1, cd, k, k)
    folded = fold_patches_taps(patches, Hs, Ws, nr1, nc1, k, s1, pad_fold)
    inv_counts = fold_inv_counts(Hs, Ws, k, s1, pad_fold)
    ce_branch = (folded * inv_counts).reshape(B, NCE * cd, Hs, Ws)

    # --- 1x1 conv (bias) -> UpSample (bilinear 2x + 1x1 conv, no bias) ---
    ce_branch = pointwise_conv(ce_branch, params["mid_w"], params["mid_b"])
    up = pointwise_conv(upsample_2x_bilinear(ce_branch), params["up_w"])

    # --- final 1x1 conv fused with the residual add ---
    return pointwise_conv(up, params["final_w"], residual=x)


# ----------------------------------------------------------------------------
# Deterministic parameter init (same shapes as the PyTorch module; gentle
# scales keep the x10-softmax logits O(1)).
# ----------------------------------------------------------------------------
def init_params(key, dim):
    k = KSIZE
    cd = dim // 2
    cin = 2 * dim
    F = cd * k * k
    Cf = (k * k * cd) // 4
    Fp = _round_up(F, 128)
    Cfp = _round_up(Cf, 128)
    ks = jax.random.split(key, 17)
    nrm = lambda kk, shape, s: s * jax.random.normal(kk, shape, jnp.float32)
    raw = dict(
        down_w=nrm(ks[0], (cin, dim), 0.15),
        g_w=nrm(ks[1], (NCE, cd, cin, 3, 3), 0.08),
        g_b=nrm(ks[2], (NCE, cd), 0.05),
        theta_w=nrm(ks[3], (NCE, cd, cin), 0.2),
        theta_b=nrm(ks[4], (NCE, cd), 0.05),
        thr_w=nrm(ks[5], (NCE, 1, cin, k, k), 0.01),
        thr_b=nrm(ks[6], (NCE,), 0.02),
        bias_w=nrm(ks[7], (NCE, 1, cin, k, k), 0.01),
        bias_b=nrm(ks[8], (NCE,), 0.02),
        fc1_w=nrm(ks[9], (NCE, Cf, F), 0.05),
        fc1_b=nrm(ks[10], (NCE, Cf), 0.02),
        fc2_w=nrm(ks[11], (NCE, Cf, F), 0.05),
        fc2_b=nrm(ks[12], (NCE, Cf), 0.02),
        mid_w=nrm(ks[13], (cin, cin), 0.1),
        mid_b=nrm(ks[14], (cin,), 0.02),
        up_w=nrm(ks[15], (dim, cin), 0.1),
        final_w=nrm(ks[16], (dim, dim), 0.1),
    )

    def pad_wT(wt):   # (NCE, Cf, F) -> (NCE, Fp, Cfp) bf16, zero-padded
        wt = jnp.transpose(wt, (0, 2, 1))
        wt = jnp.pad(wt, ((0, 0), (0, Fp - F), (0, Cfp - Cf)))
        return wt.astype(jnp.bfloat16)

    def pad_b(bb):    # (NCE, Cf) -> (NCE, 1, Cfp) f32, zero-padded
        return jnp.pad(bb, ((0, 0), (0, Cfp - Cf))).reshape(NCE, 1, Cfp)

    # fused 3x3 weight, tap-major features to match the im2col stacking order
    g_w_flat = jnp.transpose(raw["g_w"].reshape(NCE * cd, cin, 3, 3),
                             (0, 2, 3, 1)).reshape(NCE * cd, 9 * cin)

    params = dict(
        down_w=raw["down_w"],
        g_w_flat=g_w_flat,
        g_b=raw["g_b"].reshape(NCE * cd),
        theta_w=raw["theta_w"].reshape(NCE * cd, cin),
        theta_b=raw["theta_b"].reshape(NCE * cd),
        fc1_wT=pad_wT(raw["fc1_w"]), fc1_b=pad_b(raw["fc1_b"]),
        fc2_wT=pad_wT(raw["fc2_w"]), fc2_b=pad_b(raw["fc2_b"]),
        tb_w=jnp.stack([raw["thr_w"].reshape(NCE, cin * k * k),
                        raw["bias_w"].reshape(NCE, cin * k * k)], axis=-1),
        tb_b=jnp.stack([raw["thr_b"], raw["bias_b"]], axis=-1),   # (NCE, 2)
        mid_w=raw["mid_w"], mid_b=raw["mid_b"],
        up_w=raw["up_w"],
        final_w=raw["final_w"],
    )
    return params, raw


# ----------------------------------------------------------------------------
# Pure-JAX reference (lax convs + einsums) for correctness checking.
# ----------------------------------------------------------------------------
def ref_forward(x, raw):
    B, dim, H, W = x.shape
    cd = dim // 2
    k, s1, s2 = KSIZE, STRIDE1, STRIDE2
    dn = ("NCHW", "OIHW", "NCHW")

    def conv1x1(v, w, b=None):
        y = jax.lax.conv_general_dilated(v, w[:, :, None, None], (1, 1), "VALID",
                                         dimension_numbers=dn)
        return y if b is None else y + b.reshape(1, -1, 1, 1)

    res = conv1x1(avg_pool_2x2(x), raw["down_w"])
    _, _, Hs, Ws = res.shape

    outs = []
    for e in range(NCE):
        b1 = jax.lax.conv_general_dilated(res, raw["g_w"][e], (1, 1),
                                          ((1, 1), (1, 1)), dimension_numbers=dn)
        b1 = b1 + raw["g_b"][e].reshape(1, -1, 1, 1)
        b2 = conv1x1(res, raw["theta_w"][e], raw["theta_b"][e])
        b3 = b1

        b4, _ = same_pad_2d(res, k, s1)
        thr = jax.lax.conv_general_dilated(b4, raw["thr_w"][e], (s1, s1), "VALID",
                                           dimension_numbers=dn) + raw["thr_b"][e]
        sbias = jax.lax.conv_general_dilated(b4, raw["bias_w"][e], (s1, s1), "VALID",
                                             dimension_numbers=dn) + raw["bias_b"][e]
        thr = thr.reshape(B, -1)
        sbias = sbias.reshape(B, -1)

        p28, _ = extract_patches(b1, k, s1)
        pv, _ = extract_patches(b2, k, s2)
        px, _ = extract_patches(b3, k, s2)

        wi = jax.nn.relu(jnp.einsum("blf,cf->blc", p28, raw["fc1_w"][e]) + raw["fc1_b"][e])
        xi = jax.nn.relu(jnp.einsum("blf,cf->blc", px, raw["fc2_w"][e]) + raw["fc2_b"][e])
        score = jnp.einsum("blc,bmc->blm", wi, xi)
        mean = score.mean(axis=2, keepdims=True)
        mask = jax.nn.relu(score - mean * thr[:, :, None] + sbias[:, :, None])
        mask_b = (mask > 0.0).astype(jnp.float32)
        yi = score * mask
        yi = jax.nn.softmax(yi * SOFTMAX_SCALE, axis=2) * mask_b
        agg = jnp.einsum("blm,bmf->blf", yi, pv)

        patches = agg.reshape(B, agg.shape[1], cd, k, k)
        pad_fold = (k - 1) // 2
        folded = fold_patches_ref(patches, Hs, Ws, k, s1, pad_fold)
        counts = fold_counts_ref(Hs, Ws, k, s1, pad_fold)
        outs.append(folded / counts)

    ce = jnp.concatenate(outs, axis=1)
    ce = conv1x1(ce, raw["mid_w"], raw["mid_b"])
    up = conv1x1(upsample_2x_bilinear(ce), raw["up_w"])
    out = conv1x1(up, raw["final_w"])
    return out + x


if __name__ == "__main__":
    dim = 8                        # BasicgrapBlock 'dim' (must be even)
    B, H, W = 2, 16, 16

    key = jax.random.PRNGKey(0)
    kx, kp = jax.random.split(key)
    x = jax.random.normal(kx, (B, dim, H, W), jnp.float32)
    params, raw = init_params(kp, dim)

    fwd = jax.jit(basicgrap_forward)
    out = jax.block_until_ready(fwd(x, params))
    assert out.shape == (B, dim, H, W)

    ref = jax.block_until_ready(ref_forward(x, raw))
    err = float(jnp.max(jnp.abs(out - ref)))
    scale = float(jnp.max(jnp.abs(ref))) + 1e-6
    assert err / scale < 3e-2, f"mismatch vs reference: abs={err:.3e} rel={err / scale:.3e}"

    print("KERNEL_OK")
</pallas_src>

<mosaic_0001>
module attributes {stable_mosaic.version = 11 : i64} {
  func.func @_pw_kernel(%arg0: i32, %arg1: i32, %arg2: memref<1x8x128xbf16, #tpu.memory_space<vmem>>, %arg3: memref<16x8xbf16, #tpu.memory_space<vmem>>, %arg4: memref<16x1xf32, #tpu.memory_space<vmem>>, %arg5: memref<1x16x128xf32, #tpu.memory_space<vmem>>) attributes {dimension_semantics = [#tpu.dimension_semantics<parallel>, #tpu.dimension_semantics<parallel>], iteration_bounds = array<i64: 2, 1>, scalar_prefetch = 0 : i64, scratch_operands = 0 : i64, tpu.core_type = #tpu.core_type<tc>, window_params = [{transform_indices = @transform_0, window_bounds = array<i64: 1, 8, 128>}, {pipeline_mode = #tpu.pipeline_mode<synchronous>, transform_indices = @transform_1, window_bounds = array<i64: 16, 8>}, {pipeline_mode = #tpu.pipeline_mode<synchronous>, transform_indices = @transform_2, window_bounds = array<i64: 16, 1>}, {transform_indices = @transform_3, window_bounds = array<i64: 1, 16, 128>}]} {
    %c0 = arith.constant 0 : index
    %c0_0 = arith.constant 0 : index
    %0 = vector.load %arg3[%c0, %c0_0] : memref<16x8xbf16, #tpu.memory_space<vmem>>, vector<16x8xbf16>
    %c0_1 = arith.constant 0 : index
    %c0_2 = arith.constant 0 : index
    %c0_3 = arith.constant 0 : index
    %1 = vector.load %arg2[%c0_1, %c0_2, %c0_3] : memref<1x8x128xbf16, #tpu.memory_space<vmem>>, vector<1x8x128xbf16>
    %2 = vector.shape_cast %1 : vector<1x8x128xbf16> to vector<8x128xbf16>
    %cst = arith.constant dense<0.000000e+00> : vector<16x128xf32>
    %3 = tpu.matmul %0, %2, %cst {dimension_numbers = #tpu.dot_dimension_numbers<[1], [0], [0], [1], [0, 0, 1, 1], [], []>} : vector<16x8xbf16>, vector<8x128xbf16>, vector<16x128xf32> -> vector<16x128xf32>
    %c0_4 = arith.constant 0 : index
    %c0_5 = arith.constant 0 : index
    %4 = vector.load %arg4[%c0_4, %c0_5] : memref<16x1xf32, #tpu.memory_space<vmem>>, vector<16x1xf32>
    %5 = vector.broadcast %4 : vector<16x1xf32> to vector<16x128xf32>
    %6 = arith.addf %3, %5 : vector<16x128xf32>
    %c0_6 = arith.constant 0 : index
    %c0_7 = arith.constant 0 : index
    %c0_8 = arith.constant 0 : index
    %7 = vector.load %arg5[%c0_6, %c0_7, %c0_8] : memref<1x16x128xf32, #tpu.memory_space<vmem>>, vector<1x16x128xf32>
    %8 = vector.shape_cast %7 : vector<1x16x128xf32> to vector<16x128xf32>
    %9 = vector.shape_cast %6 : vector<16x128xf32> to vector<1x16x128xf32>
    tpu.vector_store %arg5[%c0_6, %c0_7, %c0_8], %9 {strides = array<i32>} : memref<1x16x128xf32, #tpu.memory_space<vmem>>, vector<1x16x128xf32>,
    return
  }
  func.func @transform_0(%arg0: i32, %arg1: i32) -> (i32, i32, i32) {
    %c0_i32 = arith.constant 0 : i32
    %c0_i32_0 = arith.constant 0 : i32
    return %arg0, %c0_i32, %arg1 : i32, i32, i32
  }
  func.func @transform_1(%arg0: i32, %arg1: i32) -> (i32, i32) {
    %c0_i32 = arith.constant 0 : i32
    %c0_i32_0 = arith.constant 0 : i32
    %c0_i32_1 = arith.constant 0 : i32
    return %c0_i32, %c0_i32_0 : i32, i32
  }
  func.func @transform_2(%arg0: i32, %arg1: i32) -> (i32, i32) {
    %c0_i32 = arith.constant 0 : i32
    %c0_i32_0 = arith.constant 0 : i32
    %c0_i32_1 = arith.constant 0 : i32
    return %c0_i32, %c0_i32_0 : i32, i32
  }
  func.func @transform_3(%arg0: i32, %arg1: i32) -> (i32, i32, i32) {
    %c0_i32 = arith.constant 0 : i32
    %c0_i32_0 = arith.constant 0 : i32
    return %arg0, %c0_i32, %arg1 : i32, i32, i32
  }
}

module attributes {stable_mosaic.version = 11 : i64} {
  func.func @_pw_kernel(%arg0: i32, %arg1: i32, %arg2: memref<1x16x128xbf16, #tpu.memory_space<vmem>>, %arg3: memref<16x16xbf16, #tpu.memory_space<vmem>>, %arg4: memref<16x1xf32, #tpu.memory_space<vmem>>, %arg5: memref<1x16x128xf32, #tpu.memory_space<vmem>>) attributes {dimension_semantics = [#tpu.dimension_semantics<parallel>, #tpu.dimension_semantics<parallel>], iteration_bounds = array<i64: 2, 1>, scalar_prefetch = 0 : i64, scratch_operands = 0 : i64, tpu.core_type = #tpu.core_type<tc>, window_params = [{transform_indices = @transform_0, window_bounds = array<i64: 1, 16, 128>}, {pipeline_mode = #tpu.pipeline_mode<synchronous>, transform_indices = @transform_1, window_bounds = array<i64: 16, 16>}, {pipeline_mode = #tpu.pipeline_mode<synchronous>, transform_indices = @transform_2, window_bounds = array<i64: 16, 1>}, {transform_indices = @transform_3, window_bounds = array<i64: 1, 16, 128>}]} {
    %c0 = arith.constant 0 : index
    %c0_0 = arith.constant 0 : index
    %0 = vector.load %arg3[%c0, %c0_0] : memref<16x16xbf16, #tpu.memory_space<vmem>>, vector<16x16xbf16>
    %c0_1 = arith.constant 0 : index
    %c0_2 = arith.constant 0 : index
    %c0_3 = arith.constant 0 : index
    %1 = vector.load %arg2[%c0_1, %c0_2, %c0_3] : memref<1x16x128xbf16, #tpu.memory_space<vmem>>, vector<1x16x128xbf16>
    %2 = vector.shape_cast %1 : vector<1x16x128xbf16> to vector<16x128xbf16>
    %cst = arith.constant dense<0.000000e+00> : vector<16x128xf32>
    %3 = tpu.matmul %0, %2, %cst {dimension_numbers = #tpu.dot_dimension_numbers<[1], [0], [0], [1], [0, 0, 1, 1], [], []>} : vector<16x16xbf16>, vector<16x128xbf16>, vector<16x128xf32> -> vector<16x128xf32>
    %c0_4 = arith.constant 0 : index
    %c0_5 = arith.constant 0 : index
    %4 = vector.load %arg4[%c0_4, %c0_5] : memref<16x1xf32, #tpu.memory_space<vmem>>, vector<16x1xf32>
    %5 = vector.broadcast %4 : vector<16x1xf32> to vector<16x128xf32>
    %6 = arith.addf %3, %5 : vector<16x128xf32>
    %c0_6 = arith.constant 0 : index
    %c0_7 = arith.constant 0 : index
    %c0_8 = arith.constant 0 : index
    %7 = vector.load %arg5[%c0_6, %c0_7, %c0_8] : memref<1x16x128xf32, #tpu.memory_space<vmem>>, vector<1x16x128xf32>
    %8 = vector.shape_cast %7 : vector<1x16x128xf32> to vector<16x128xf32>
    %9 = vector.shape_cast %6 : vector<16x128xf32> to vector<1x16x128xf32>
    tpu.vector_store %arg5[%c0_6, %c0_7, %c0_8], %9 {strides = array<i32>} : memref<1x16x128xf32, #tpu.memory_space<vmem>>, vector<1x16x128xf32>,
    return
  }
  func.func @transform_0(%arg0: i32, %arg1: i32) -> (i32, i32, i32) {
    %c0_i32 = arith.constant 0 : i32
    %c0_i32_0 = arith.constant 0 : i32
    return %arg0, %c0_i32, %arg1 : i32, i32, i32
  }
  func.func @transform_1(%arg0: i32, %arg1: i32) -> (i32, i32) {
    %c0_i32 = arith.constant 0 : i32
    %c0_i32_0 = arith.constant 0 : i32
    %c0_i32_1 = arith.constant 0 : i32
    return %c0_i32, %c0_i32_0 : i32, i32
  }
  func.func @transform_2(%arg0: i32, %arg1: i32) -> (i32, i32) {
    %c0_i32 = arith.constant 0 : i32
    %c0_i32_0 = arith.constant 0 : i32
    %c0_i32_1 = arith.constant 0 : i32
    return %c0_i32, %c0_i32_0 : i32, i32
  }
  func.func @transform_3(%arg0: i32, %arg1: i32) -> (i32, i32, i32) {
    %c0_i32 = arith.constant 0 : i32
    %c0_i32_0 = arith.constant 0 : i32
    return %arg0, %c0_i32, %arg1 : i32, i32, i32
  }
}

module attributes {stable_mosaic.version = 11 : i64} {
  func.func @_pw_kernel(%arg0: i32, %arg1: i32, %arg2: memref<1x144x128xbf16, #tpu.memory_space<vmem>>, %arg3: memref<16x144xbf16, #tpu.memory_space<vmem>>, %arg4: memref<16x1xf32, #tpu.memory_space<vmem>>, %arg5: memref<1x16x128xf32, #tpu.memory_space<vmem>>) attributes {dimension_semantics = [#tpu.dimension_semantics<parallel>, #tpu.dimension_semantics<parallel>], iteration_bounds = array<i64: 2, 1>, scalar_prefetch = 0 : i64, scratch_operands = 0 : i64, tpu.core_type = #tpu.core_type<tc>, window_params = [{transform_indices = @transform_0, window_bounds = array<i64: 1, 144, 128>}, {pipeline_mode = #tpu.pipeline_mode<synchronous>, transform_indices = @transform_1, window_bounds = array<i64: 16, 144>}, {pipeline_mode = #tpu.pipeline_mode<synchronous>, transform_indices = @transform_2, window_bounds = array<i64: 16, 1>}, {transform_indices = @transform_3, window_bounds = array<i64: 1, 16, 128>}]} {
    %c0 = arith.constant 0 : index
    %c0_0 = arith.constant 0 : index
    %0 = vector.load %arg3[%c0, %c0_0] : memref<16x144xbf16, #tpu.memory_space<vmem>>, vector<16x144xbf16>
    %c0_1 = arith.constant 0 : index
    %c0_2 = arith.constant 0 : index
    %c0_3 = arith.constant 0 : index
    %1 = vector.load %arg2[%c0_1, %c0_2, %c0_3] : memref<1x144x128xbf16, #tpu.memory_space<vmem>>, vector<1x144x128xbf16>
    %2 = vector.shape_cast %1 : vector<1x144x128xbf16> to vector<144x128xbf16>
    %cst = arith.constant dense<0.000000e+00> : vector<16x128xf32>
    %3 = tpu.matmul %0, %2, %cst {dimension_numbers = #tpu.dot_dimension_numbers<[1], [0], [0], [1], [0, 0, 1, 1], [], []>} : vector<16x144xbf16>, vector<144x128xbf16>, vector<16x128xf32> -> vector<16x128xf32>
    %c0_4 = arith.constant 0 : index
    %c0_5 = arith.constant 0 : index
    %4 = vector.load %arg4[%c0_4, %c0_5] : memref<16x1xf32, #tpu.memory_space<vmem>>, vector<16x1xf32>
    %5 = vector.broadcast %4 : vector<16x1xf32> to vector<16x128xf32>
    %6 = arith.addf %3, %5 : vector<16x128xf32>
    %c0_6 = arith.constant 0 : index
    %c0_7 = arith.constant 0 : index
    %c0_8 = arith.constant 0 : index
    %7 = vector.load %arg5[%c0_6, %c0_7, %c0_8] : memref<1x16x128xf32, #tpu.memory_space<vmem>>, vector<1x16x128xf32>
    %8 = vector.shape_cast %7 : vector<1x16x128xf32> to vector<16x128xf32>
    %9 = vector.shape_cast %6 : vector<16x128xf32> to vector<1x16x128xf32>
    tpu.vector_store %arg5[%c0_6, %c0_7, %c0_8], %9 {strides = array<i32>} : memref<1x16x128xf32, #tpu.memory_space<vmem>>, vector<1x16x128xf32>,
    return
  }
  func.func @transform_0(%arg0: i32, %arg1: i32) -> (i32, i32, i32) {
    %c0_i32 = arith.constant 0 : i32
    %c0_i32_0 = arith.constant 0 : i32
    return %arg0, %c0_i32, %arg1 : i32, i32, i32
  }
  func.func @transform_1(%arg0: i32, %arg1: i32) -> (i32, i32) {
    %c0_i32 = arith.constant 0 : i32
    %c0_i32_0 = arith.constant 0 : i32
    %c0_i32_1 = arith.constant 0 : i32
    return %c0_i32, %c0_i32_0 : i32, i32
  }
  func.func @transform_2(%arg0: i32, %arg1: i32) -> (i32, i32) {
    %c0_i32 = arith.constant 0 : i32
    %c0_i32_0 = arith.constant 0 : i32
    %c0_i32_1 = arith.constant 0 : i32
    return %c0_i32, %c0_i32_0 : i32, i32
  }
  func.func @transform_3(%arg0: i32, %arg1: i32) -> (i32, i32, i32) {
    %c0_i32 = arith.constant 0 : i32
    %c0_i32_0 = arith.constant 0 : i32
    return %arg0, %c0_i32, %arg1 : i32, i32, i32
  }
}

module attributes {stable_mosaic.version = 11 : i64} {
  func.func @_linrelu_kernel(%arg0: i32, %arg1: i32, %arg2: i32, %arg3: memref<1x1x64x256xbf16, #tpu.memory_space<vmem>>, %arg4: memref<1x256x128xbf16, #tpu.memory_space<vmem>>, %arg5: memref<1x1x128xf32, #tpu.memory_space<vmem>>, %arg6: memref<1x1x64x128xbf16, #tpu.memory_space<vmem>>) attributes {dimension_semantics = [#tpu.dimension_semantics<parallel>, #tpu.dimension_semantics<parallel>, #tpu.dimension_semantics<parallel>], iteration_bounds = array<i64: 4, 2, 1>, scalar_prefetch = 0 : i64, scratch_operands = 0 : i64, tpu.core_type = #tpu.core_type<tc>, window_params = [{transform_indices = @transform_0, window_bounds = array<i64: 1, 1, 64, 256>}, {transform_indices = @transform_1, window_bounds = array<i64: 1, 256, 128>}, {transform_indices = @transform_2, window_bounds = array<i64: 1, 1, 128>}, {transform_indices = @transform_3, window_bounds = array<i64: 1, 1, 64, 128>}]} {
    %c0 = arith.constant 0 : index
    %c0_0 = arith.constant 0 : index
    %c0_1 = arith.constant 0 : index
    %c0_2 = arith.constant 0 : index
    %0 = vector.load %arg3[%c0, %c0_0, %c0_1, %c0_2] : memref<1x1x64x256xbf16, #tpu.memory_space<vmem>>, vector<1x1x64x256xbf16>
    %1 = vector.shape_cast %0 : vector<1x1x64x256xbf16> to vector<64x256xbf16>
    %c0_3 = arith.constant 0 : index
    %c0_4 = arith.constant 0 : index
    %c0_5 = arith.constant 0 : index
    %2 = vector.load %arg4[%c0_3, %c0_4, %c0_5] : memref<1x256x128xbf16, #tpu.memory_space<vmem>>, vector<1x256x128xbf16>
    %3 = vector.shape_cast %2 : vector<1x256x128xbf16> to vector<256x128xbf16>
    %cst = arith.constant dense<0.000000e+00> : vector<64x128xf32>
    %4 = tpu.matmul %1, %3, %cst {dimension_numbers = #tpu.dot_dimension_numbers<[1], [0], [0], [1], [0, 0, 1, 1], [], []>} : vector<64x256xbf16>, vector<256x128xbf16>, vector<64x128xf32> -> vector<64x128xf32>
    %c0_6 = arith.constant 0 : index
    %c0_7 = arith.constant 0 : index
    %c0_8 = arith.constant 0 : index
    %5 = vector.load %arg5[%c0_6, %c0_7, %c0_8] : memref<1x1x128xf32, #tpu.memory_space<vmem>>, vector<1x1x128xf32>
    %6 = vector.shape_cast %5 : vector<1x1x128xf32> to vector<1x128xf32>
    %7 = vector.broadcast %6 : vector<1x128xf32> to vector<64x128xf32>
    %8 = arith.addf %4, %7 : vector<64x128xf32>
    %cst_9 = arith.constant 0.000000e+00 : f32
    %9 = vector.broadcast %cst_9 : f32 to vector<64x128xf32>
    %10 = arith.maximumf %8, %9 : vector<64x128xf32>
    %11 = arith.truncf %10 : vector<64x128xf32> to vector<64x128xbf16>
    %c0_10 = arith.constant 0 : index
    %c0_11 = arith.constant 0 : index
    %c0_12 = arith.constant 0 : index
    %c0_13 = arith.constant 0 : index
    %12 = vector.load %arg6[%c0_10, %c0_11, %c0_12, %c0_13] : memref<1x1x64x128xbf16, #tpu.memory_space<vmem>>, vector<1x1x64x128xbf16>
    %13 = vector.shape_cast %12 : vector<1x1x64x128xbf16> to vector<64x128xbf16>
    %14 = vector.shape_cast %11 : vector<64x128xbf16> to vector<1x1x64x128xbf16>
    tpu.vector_store %arg6[%c0_10, %c0_11, %c0_12, %c0_13], %14 {strides = array<i32>} : memref<1x1x64x128xbf16, #tpu.memory_space<vmem>>, vector<1x1x64x128xbf16>,
    return
  }
  func.func @transform_0(%arg0: i32, %arg1: i32, %arg2: i32) -> (i32, i32, i32, i32) {
    %c0_i32 = arith.constant 0 : i32
    %c0_i32_0 = arith.constant 0 : i32
    return %arg0, %arg1, %arg2, %c0_i32 : i32, i32, i32, i32
  }
  func.func @transform_1(%arg0: i32, %arg1: i32, %arg2: i32) -> (i32, i32, i32) {
    %c0_i32 = arith.constant 0 : i32
    %c0_i32_0 = arith.constant 0 : i32
    %c0_i32_1 = arith.constant 0 : i32
    return %arg0, %c0_i32, %c0_i32_0 : i32, i32, i32
  }
  func.func @transform_2(%arg0: i32, %arg1: i32, %arg2: i32) -> (i32, i32, i32) {
    %c0_i32 = arith.constant 0 : i32
    %c0_i32_0 = arith.constant 0 : i32
    %c0_i32_1 = arith.constant 0 : i32
    return %arg0, %c0_i32, %c0_i32_0 : i32, i32, i32
  }
  func.func @transform_3(%arg0: i32, %arg1: i32, %arg2: i32) -> (i32, i32, i32, i32) {
    %c0_i32 = arith.constant 0 : i32
    %c0_i32_0 = arith.constant 0 : i32
    return %arg0, %arg1, %arg2, %c0_i32 : i32, i32, i32, i32
  }
}

module attributes {stable_mosaic.version = 11 : i64} {
  func.func @_linrelu_kernel(%arg0: i32, %arg1: i32, %arg2: i32, %arg3: memref<1x1x4x256xbf16, #tpu.memory_space<vmem>>, %arg4: memref<1x256x128xbf16, #tpu.memory_space<vmem>>, %arg5: memref<1x1x128xf32, #tpu.memory_space<vmem>>, %arg6: memref<1x1x4x128xbf16, #tpu.memory_space<vmem>>) attributes {dimension_semantics = [#tpu.dimension_semantics<parallel>, #tpu.dimension_semantics<parallel>, #tpu.dimension_semantics<parallel>], iteration_bounds = array<i64: 4, 2, 1>, scalar_prefetch = 0 : i64, scratch_operands = 0 : i64, tpu.core_type = #tpu.core_type<tc>, window_params = [{transform_indices = @transform_0, window_bounds = array<i64: 1, 1, 4, 256>}, {transform_indices = @transform_1, window_bounds = array<i64: 1, 256, 128>}, {transform_indices = @transform_2, window_bounds = array<i64: 1, 1, 128>}, {transform_indices = @transform_3, window_bounds = array<i64: 1, 1, 4, 128>}]} {
    %c0 = arith.constant 0 : index
    %c0_0 = arith.constant 0 : index
    %c0_1 = arith.constant 0 : index
    %c0_2 = arith.constant 0 : index
    %0 = vector.load %arg3[%c0, %c0_0, %c0_1, %c0_2] : memref<1x1x4x256xbf16, #tpu.memory_space<vmem>>, vector<1x1x4x256xbf16>
    %1 = vector.shape_cast %0 : vector<1x1x4x256xbf16> to vector<4x256xbf16>
    %c0_3 = arith.constant 0 : index
    %c0_4 = arith.constant 0 : index
    %c0_5 = arith.constant 0 : index
    %2 = vector.load %arg4[%c0_3, %c0_4, %c0_5] : memref<1x256x128xbf16, #tpu.memory_space<vmem>>, vector<1x256x128xbf16>
    %3 = vector.shape_cast %2 : vector<1x256x128xbf16> to vector<256x128xbf16>
    %cst = arith.constant dense<0.000000e+00> : vector<4x128xf32>
    %4 = tpu.matmul %1, %3, %cst {dimension_numbers = #tpu.dot_dimension_numbers<[1], [0], [0], [1], [0, 0, 1, 1], [], []>} : vector<4x256xbf16>, vector<256x128xbf16>, vector<4x128xf32> -> vector<4x128xf32>
    %c0_6 = arith.constant 0 : index
    %c0_7 = arith.constant 0 : index
    %c0_8 = arith.constant 0 : index
    %5 = vector.load %arg5[%c0_6, %c0_7, %c0_8] : memref<1x1x128xf32, #tpu.memory_space<vmem>>, vector<1x1x128xf32>
    %6 = vector.shape_cast %5 : vector<1x1x128xf32> to vector<1x128xf32>
    %7 = vector.broadcast %6 : vector<1x128xf32> to vector<4x128xf32>
    %8 = arith.addf %4, %7 : vector<4x128xf32>
    %cst_9 = arith.constant 0.000000e+00 : f32
    %9 = vector.broadcast %cst_9 : f32 to vector<4x128xf32>
    %10 = arith.maximumf %8, %9 : vector<4x128xf32>
    %11 = arith.truncf %10 : vector<4x128xf32> to vector<4x128xbf16>
    %c0_10 = arith.constant 0 : index
    %c0_11 = arith.constant 0 : index
    %c0_12 = arith.constant 0 : index
    %c0_13 = arith.constant 0 : index
    %12 = vector.load %arg6[%c0_10, %c0_11, %c0_12, %c0_13] : memref<1x1x4x128xbf16, #tpu.memory_space<vmem>>, vector<1x1x4x128xbf16>
    %13 = vector.shape_cast %12 : vector<1x1x4x128xbf16> to vector<4x128xbf16>
    %14 = vector.shape_cast %11 : vector<4x128xbf16> to vector<1x1x4x128xbf16>
    tpu.vector_store %arg6[%c0_10, %c0_11, %c0_12, %c0_13], %14 {strides = array<i32>} : memref<1x1x4x128xbf16, #tpu.memory_space<vmem>>, vector<1x1x4x128xbf16>,
    return
  }
  func.func @transform_0(%arg0: i32, %arg1: i32, %arg2: i32) -> (i32, i32, i32, i32) {
    %c0_i32 = arith.constant 0 : i32
    %c0_i32_0 = arith.constant 0 : i32
    return %arg0, %arg1, %arg2, %c0_i32 : i32, i32, i32, i32
  }
  func.func @transform_1(%arg0: i32, %arg1: i32, %arg2: i32) -> (i32, i32, i32) {
    %c0_i32 = arith.constant 0 : i32
    %c0_i32_0 = arith.constant 0 : i32
    %c0_i32_1 = arith.constant 0 : i32
    return %arg0, %c0_i32, %c0_i32_0 : i32, i32, i32
  }
  func.func @transform_2(%arg0: i32, %arg1: i32, %arg2: i32) -> (i32, i32, i32) {
    %c0_i32 = arith.constant 0 : i32
    %c0_i32_0 = arith.constant 0 : i32
    %c0_i32_1 = arith.constant 0 : i32
    return %arg0, %c0_i32, %c0_i32_0 : i32, i32, i32
  }
  func.func @transform_3(%arg0: i32, %arg1: i32, %arg2: i32) -> (i32, i32, i32, i32) {
    %c0_i32 = arith.constant 0 : i32
    %c0_i32_0 = arith.constant 0 : i32
    return %arg0, %arg1, %arg2, %c0_i32 : i32, i32, i32, i32
  }
}

module attributes {stable_mosaic.version = 11 : i64} {
  func.func @_ce_core_kernel(%arg0: i32, %arg1: i32, %arg2: i32, %arg3: memref<1x1x4x128xbf16, #tpu.memory_space<vmem>>, %arg4: memref<1x1x4x1xf32, #tpu.memory_space<vmem>>, %arg5: memref<1x1x64x128xbf16, #tpu.memory_space<vmem>>, %arg6: memref<1x1x64x256xbf16, #tpu.memory_space<vmem>>, %arg7: memref<1x1x4x256xf32, #tpu.memory_space<vmem>>, %arg8: memref<4x1xf32, #tpu.memory_space<vmem>>, %arg9: memref<4x1xf32, #tpu.memory_space<vmem>>, %arg10: memref<4x256xf32, #tpu.memory_space<vmem>>) attributes {dimension_semantics = [#tpu.dimension_semantics<parallel>, #tpu.dimension_semantics<parallel>, #tpu.dimension_semantics<arbitrary>], iteration_bounds = array<i64: 2, 4, 1>, scalar_prefetch = 0 : i64, scratch_operands = 3 : i64, tpu.core_type = #tpu.core_type<tc>, window_params = [{transform_indices = @transform_0, window_bounds = array<i64: 1, 1, 4, 128>}, {transform_indices = @transform_1, window_bounds = array<i64: 1, 1, 4, 1>}, {transform_indices = @transform_2, window_bounds = array<i64: 1, 1, 64, 128>}, {transform_indices = @transform_3, window_bounds = array<i64: 1, 1, 64, 256>}, {transform_indices = @transform_4, window_bounds = array<i64: 1, 1, 4, 256>}]} {
    %c0_i32 = arith.constant 0 : i32
    %0 = arith.cmpi eq, %arg2, %c0_i32 : i32
    %1 = arith.extui %0 : i1 to i32
    %c0_i32_0 = arith.constant 0 : i32
    %2 = arith.cmpi ne, %1, %c0_i32_0 : i32
    scf.if %2 {
      %cst_36 = arith.constant -1.000000e+30 : f32
      %50 = vector.broadcast %cst_36 : f32 to vector<4x1xf32>
      %c0_37 = arith.constant 0 : index
      %c0_38 = arith.constant 0 : index
      %51 = vector.load %arg8[%c0_37, %c0_38] : memref<4x1xf32, #tpu.memory_space<vmem>>, vector<4x1xf32>
      tpu.vector_store %arg8[%c0_37, %c0_38], %50 {strides = array<i32>} : memref<4x1xf32, #tpu.memory_space<vmem>>, vector<4x1xf32>,
      %cst_39 = arith.constant 0.000000e+00 : f32
      %52 = vector.broadcast %cst_39 : f32 to vector<4x1xf32>
      %c0_40 = arith.constant 0 : index
      %c0_41 = arith.constant 0 : index
      %53 = vector.load %arg9[%c0_40, %c0_41] : memref<4x1xf32, #tpu.memory_space<vmem>>, vector<4x1xf32>
      tpu.vector_store %arg9[%c0_40, %c0_41], %52 {strides = array<i32>} : memref<4x1xf32, #tpu.memory_space<vmem>>, vector<4x1xf32>,
      %cst_42 = arith.constant 0.000000e+00 : f32
      %54 = vector.broadcast %cst_42 : f32 to vector<4x256xf32>
      %c0_43 = arith.constant 0 : index
      %c0_44 = arith.constant 0 : index
      %55 = vector.load %arg10[%c0_43, %c0_44] : memref<4x256xf32, #tpu.memory_space<vmem>>, vector<4x256xf32>
      tpu.vector_store %arg10[%c0_43, %c0_44], %54 {strides = array<i32>} : memref<4x256xf32, #tpu.memory_space<vmem>>, vector<4x256xf32>,
    } else {
    }
    %c0 = arith.constant 0 : index
    %c0_1 = arith.constant 0 : index
    %c0_2 = arith.constant 0 : index
    %c0_3 = arith.constant 0 : index
    %3 = vector.load %arg3[%c0, %c0_1, %c0_2, %c0_3] : memref<1x1x4x128xbf16, #tpu.memory_space<vmem>>, vector<1x1x4x128xbf16>
    %4 = vector.shape_cast %3 : vector<1x1x4x128xbf16> to vector<4x128xbf16>
    %c0_4 = arith.constant 0 : index
    %c0_5 = arith.constant 0 : index
    %c0_6 = arith.constant 0 : index
    %c0_7 = arith.constant 0 : index
    %5 = vector.load %arg5[%c0_4, %c0_5, %c0_6, %c0_7] : memref<1x1x64x128xbf16, #tpu.memory_space<vmem>>, vector<1x1x64x128xbf16>
    %6 = vector.shape_cast %5 : vector<1x1x64x128xbf16> to vector<64x128xbf16>
    %cst = arith.constant dense<0.000000e+00> : vector<4x64xf32>
    %7 = tpu.matmul %4, %6, %cst {dimension_numbers = #tpu.dot_dimension_numbers<[1], [1], [0], [0], [0, 0, 1, 0], [], []>} : vector<4x128xbf16>, vector<64x128xbf16>, vector<4x64xf32> -> vector<4x64xf32>
    %c0_8 = arith.constant 0 : index
    %c0_9 = arith.constant 0 : index
    %c0_10 = arith.constant 0 : index
    %c0_11 = arith.constant 0 : index
    %8 = vector.load %arg4[%c0_8, %c0_9, %c0_10, %c0_11] : memref<1x1x4x1xf32, #tpu.memory_space<vmem>>, vector<1x1x4x1xf32>
    %9 = vector.shape_cast %8 : vector<1x1x4x1xf32> to vector<4x1xf32>
    %10 = vector.broadcast %9 : vector<4x1xf32> to vector<4x64xf32>
    %11 = arith.subf %7, %10 : vector<4x64xf32>
    %cst_12 = arith.constant 0.000000e+00 : f32
    %12 = vector.broadcast %cst_12 : f32 to vector<4x64xf32>
    %13 = arith.maximumf %11, %12 : vector<4x64xf32>
    %14 = arith.mulf %7, %13 : vector<4x64xf32>
    %cst_13 = arith.constant 1.000000e+01 : f32
    %15 = vector.broadcast %cst_13 : f32 to vector<4x64xf32>
    %16 = arith.mulf %14, %15 : vector<4x64xf32>
    %cst_14 = arith.constant 0.000000e+00 : f32
    %17 = vector.broadcast %cst_14 : f32 to vector<4x64xf32>
    %18 = arith.cmpf ogt, %13, %17 : vector<4x64xf32>
    %19 = arith.extui %18 : vector<4x64xi1> to vector<4x64xi32>
    %20 = arith.sitofp %19 : vector<4x64xi32> to vector<4x64xf32>
    %c0_15 = arith.constant 0 : index
    %c0_16 = arith.constant 0 : index
    %21 = vector.load %arg8[%c0_15, %c0_16] : memref<4x1xf32, #tpu.memory_space<vmem>>, vector<4x1xf32>
    %cst_17 = arith.constant dense<0xFF800000> : vector<4xf32>
    %22 = vector.multi_reduction <maximumf>, %16, %cst_17 [1] : vector<4x64xf32> to vector<4xf32>
    %23 = vector.shape_cast %22 : vector<4xf32> to vector<4x1xf32>
    %24 = arith.maximumf %21, %23 : vector<4x1xf32>
    %25 = arith.subf %21, %24 : vector<4x1xf32>
    %26 = math.exp %25 : vector<4x1xf32>
    %27 = vector.broadcast %24 : vector<4x1xf32> to vector<4x64xf32>
    %28 = arith.subf %16, %27 : vector<4x64xf32>
    %29 = math.exp %28 : vector<4x64xf32>
    %c0_18 = arith.constant 0 : index
    %c0_19 = arith.constant 0 : index
    %30 = vector.load %arg9[%c0_18, %c0_19] : memref<4x1xf32, #tpu.memory_space<vmem>>, vector<4x1xf32>
    %31 = arith.mulf %26, %30 : vector<4x1xf32>
    %cst_20 = arith.constant dense<0.000000e+00> : vector<4xf32>
    %32 = vector.multi_reduction <add>, %29, %cst_20 [1] : vector<4x64xf32> to vector<4xf32>
    %33 = vector.shape_cast %32 : vector<4xf32> to vector<4x1xf32>
    %34 = arith.addf %31, %33 : vector<4x1xf32>
    %c0_21 = arith.constant 0 : index
    %c0_22 = arith.constant 0 : index
    %35 = vector.load %arg9[%c0_21, %c0_22] : memref<4x1xf32, #tpu.memory_space<vmem>>, vector<4x1xf32>
    tpu.vector_store %arg9[%c0_21, %c0_22], %34 {strides = array<i32>} : memref<4x1xf32, #tpu.memory_space<vmem>>, vector<4x1xf32>,
    %c0_23 = arith.constant 0 : index
    %c0_24 = arith.constant 0 : index
    %36 = vector.load %arg10[%c0_23, %c0_24] : memref<4x256xf32, #tpu.memory_space<vmem>>, vector<4x256xf32>
    %37 = vector.broadcast %26 : vector<4x1xf32> to vector<4x256xf32>
    %38 = arith.mulf %37, %36 : vector<4x256xf32>
    %39 = arith.mulf %29, %20 : vector<4x64xf32>
    %40 = arith.truncf %39 : vector<4x64xf32> to vector<4x64xbf16>
    %c0_25 = arith.constant 0 : index
    %c0_26 = arith.constant 0 : index
    %c0_27 = arith.constant 0 : index
    %c0_28 = arith.constant 0 : index
    %41 = vector.load %arg6[%c0_25, %c0_26, %c0_27, %c0_28] : memref<1x1x64x256xbf16, #tpu.memory_space<vmem>>, vector<1x1x64x256xbf16>
    %42 = vector.shape_cast %41 : vector<1x1x64x256xbf16> to vector<64x256xbf16>
    %cst_29 = arith.constant dense<0.000000e+00> : vector<4x256xf32>
    %43 = tpu.matmul %40, %42, %cst_29 {dimension_numbers = #tpu.dot_dimension_numbers<[1], [0], [0], [1], [0, 0, 1, 1], [], []>} : vector<4x64xbf16>, vector<64x256xbf16>, vector<4x256xf32> -> vector<4x256xf32>
    %44 = arith.addf %38, %43 : vector<4x256xf32>
    %c0_30 = arith.constant 0 : index
    %c0_31 = arith.constant 0 : index
    %45 = vector.load %arg10[%c0_30, %c0_31] : memref<4x256xf32, #tpu.memory_space<vmem>>, vector<4x256xf32>
    tpu.vector_store %arg10[%c0_30, %c0_31], %44 {strides = array<i32>} : memref<4x256xf32, #tpu.memory_space<vmem>>, vector<4x256xf32>,
    %c0_32 = arith.constant 0 : index
    %c0_33 = arith.constant 0 : index
    %46 = vector.load %arg8[%c0_32, %c0_33] : memref<4x1xf32, #tpu.memory_space<vmem>>, vector<4x1xf32>
    tpu.vector_store %arg8[%c0_32, %c0_33], %24 {strides = array<i32>} : memref<4x1xf32, #tpu.memory_space<vmem>>, vector<4x1xf32>,
    %c0_i32_34 = arith.constant 0 : i32
    %47 = arith.cmpi eq, %arg2, %c0_i32_34 : i32
    %48 = arith.extui %47 : i1 to i32
    %c0_i32_35 = arith.constant 0 : i32
    %49 = arith.cmpi ne, %48, %c0_i32_35 : i32
    scf.if %49 {
      %c0_36 = arith.constant 0 : index
      %c0_37 = arith.constant 0 : index
      %50 = vector.load %arg10[%c0_36, %c0_37] : memref<4x256xf32, #tpu.memory_space<vmem>>, vector<4x256xf32>
      %c0_38 = arith.constant 0 : index
      %c0_39 = arith.constant 0 : index
      %51 = vector.load %arg9[%c0_38, %c0_39] : memref<4x1xf32, #tpu.memory_space<vmem>>, vector<4x1xf32>
      %52 = tpu.reciprocal %51 {approx = true} : vector<4x1xf32> -> vector<4x1xf32>
      %53 = vector.broadcast %52 : vector<4x1xf32> to vector<4x256xf32>
      %54 = arith.mulf %50, %53 : vector<4x256xf32>
      %c0_40 = arith.constant 0 : index
      %c0_41 = arith.constant 0 : index
      %c0_42 = arith.constant 0 : index
      %c0_43 = arith.constant 0 : index
      %55 = vector.load %arg7[%c0_40, %c0_41, %c0_42, %c0_43] : memref<1x1x4x256xf32, #tpu.memory_space<vmem>>, vector<1x1x4x256xf32>
      %56 = vector.shape_cast %55 : vector<1x1x4x256xf32> to vector<4x256xf32>
      %57 = vector.shape_cast %54 : vector<4x256xf32> to vector<1x1x4x256xf32>
      tpu.vector_store %arg7[%c0_40, %c0_41, %c0_42, %c0_43], %57 {strides = array<i32>} : memref<1x1x4x256xf32, #tpu.memory_space<vmem>>, vector<1x1x4x256xf32>,
    } else {
    }
    return
  }
  func.func @transform_0(%arg0: i32, %arg1: i32, %arg2: i32) -> (i32, i32, i32, i32) {
    %c0_i32 = arith.constant 0 : i32
    %c0_i32_0 = arith.constant 0 : i32
    %c0_i32_1 = arith.constant 0 : i32
    return %arg1, %arg0, %c0_i32, %c0_i32_0 : i32, i32, i32, i32
  }
  func.func @transform_1(%arg0: i32, %arg1: i32, %arg2: i32) -> (i32, i32, i32, i32) {
    %c0_i32 = arith.constant 0 : i32
    %c0_i32_0 = arith.constant 0 : i32
    %c0_i32_1 = arith.constant 0 : i32
    return %arg1, %arg0, %c0_i32, %c0_i32_0 : i32, i32, i32, i32
  }
  func.func @transform_2(%arg0: i32, %arg1: i32, %arg2: i32) -> (i32, i32, i32, i32) {
    %c0_i32 = arith.constant 0 : i32
    %c0_i32_0 = arith.constant 0 : i32
    return %arg1, %arg0, %arg2, %c0_i32 : i32, i32, i32, i32
  }
  func.func @transform_3(%arg0: i32, %arg1: i32, %arg2: i32) -> (i32, i32, i32, i32) {
    %c0_i32 = arith.constant 0 : i32
    %c0_i32_0 = arith.constant 0 : i32
    return %arg1, %arg0, %arg2, %c0_i32 : i32, i32, i32, i32
  }
  func.func @transform_4(%arg0: i32, %arg1: i32, %arg2: i32) -> (i32, i32, i32, i32) {
    %c0_i32 = arith.constant 0 : i32
    %c0_i32_0 = arith.constant 0 : i32
    %c0_i32_1 = arith.constant 0 : i32
    return %arg0, %arg1, %c0_i32, %c0_i32_0 : i32, i32, i32, i32
  }
}

module attributes {stable_mosaic.version = 11 : i64} {
  func.func @_pw_kernel(%arg0: i32, %arg1: i32, %arg2: memref<1x16x256xbf16, #tpu.memory_space<vmem>>, %arg3: memref<8x16xbf16, #tpu.memory_space<vmem>>, %arg4: memref<8x1xf32, #tpu.memory_space<vmem>>, %arg5: memref<1x8x256xf32, #tpu.memory_space<vmem>>) attributes {dimension_semantics = [#tpu.dimension_semantics<parallel>, #tpu.dimension_semantics<parallel>], iteration_bounds = array<i64: 2, 1>, scalar_prefetch = 0 : i64, scratch_operands = 0 : i64, tpu.core_type = #tpu.core_type<tc>, window_params = [{transform_indices = @transform_0, window_bounds = array<i64: 1, 16, 256>}, {pipeline_mode = #tpu.pipeline_mode<synchronous>, transform_indices = @transform_1, window_bounds = array<i64: 8, 16>}, {pipeline_mode = #tpu.pipeline_mode<synchronous>, transform_indices = @transform_2, window_bounds = array<i64: 8, 1>}, {transform_indices = @transform_3, window_bounds = array<i64: 1, 8, 256>}]} {
    %c0 = arith.constant 0 : index
    %c0_0 = arith.constant 0 : index
    %0 = vector.load %arg3[%c0, %c0_0] : memref<8x16xbf16, #tpu.memory_space<vmem>>, vector<8x16xbf16>
    %c0_1 = arith.constant 0 : index
    %c0_2 = arith.constant 0 : index
    %c0_3 = arith.constant 0 : index
    %1 = vector.load %arg2[%c0_1, %c0_2, %c0_3] : memref<1x16x256xbf16, #tpu.memory_space<vmem>>, vector<1x16x256xbf16>
    %2 = vector.shape_cast %1 : vector<1x16x256xbf16> to vector<16x256xbf16>
    %cst = arith.constant dense<0.000000e+00> : vector<8x256xf32>
    %3 = tpu.matmul %0, %2, %cst {dimension_numbers = #tpu.dot_dimension_numbers<[1], [0], [0], [1], [0, 0, 1, 1], [], []>} : vector<8x16xbf16>, vector<16x256xbf16>, vector<8x256xf32> -> vector<8x256xf32>
    %c0_4 = arith.constant 0 : index
    %c0_5 = arith.constant 0 : index
    %4 = vector.load %arg4[%c0_4, %c0_5] : memref<8x1xf32, #tpu.memory_space<vmem>>, vector<8x1xf32>
    %5 = vector.broadcast %4 : vector<8x1xf32> to vector<8x256xf32>
    %6 = arith.addf %3, %5 : vector<8x256xf32>
    %c0_6 = arith.constant 0 : index
    %c0_7 = arith.constant 0 : index
    %c0_8 = arith.constant 0 : index
    %7 = vector.load %arg5[%c0_6, %c0_7, %c0_8] : memref<1x8x256xf32, #tpu.memory_space<vmem>>, vector<1x8x256xf32>
    %8 = vector.shape_cast %7 : vector<1x8x256xf32> to vector<8x256xf32>
    %9 = vector.shape_cast %6 : vector<8x256xf32> to vector<1x8x256xf32>
    tpu.vector_store %arg5[%c0_6, %c0_7, %c0_8], %9 {strides = array<i32>} : memref<1x8x256xf32, #tpu.memory_space<vmem>>, vector<1x8x256xf32>,
    return
  }
  func.func @transform_0(%arg0: i32, %arg1: i32) -> (i32, i32, i32) {
    %c0_i32 = arith.constant 0 : i32
    %c0_i32_0 = arith.constant 0 : i32
    return %arg0, %c0_i32, %arg1 : i32, i32, i32
  }
  func.func @transform_1(%arg0: i32, %arg1: i32) -> (i32, i32) {
    %c0_i32 = arith.constant 0 : i32
    %c0_i32_0 = arith.constant 0 : i32
    %c0_i32_1 = arith.constant 0 : i32
    return %c0_i32, %c0_i32_0 : i32, i32
  }
  func.func @transform_2(%arg0: i32, %arg1: i32) -> (i32, i32) {
    %c0_i32 = arith.constant 0 : i32
    %c0_i32_0 = arith.constant 0 : i32
    %c0_i32_1 = arith.constant 0 : i32
    return %c0_i32, %c0_i32_0 : i32, i32
  }
  func.func @transform_3(%arg0: i32, %arg1: i32) -> (i32, i32, i32) {
    %c0_i32 = arith.constant 0 : i32
    %c0_i32_0 = arith.constant 0 : i32
    return %arg0, %c0_i32, %arg1 : i32, i32, i32
  }
}

module attributes {stable_mosaic.version = 11 : i64} {
  func.func @_pw_res_kernel(%arg0: i32, %arg1: i32, %arg2: memref<1x8x256xbf16, #tpu.memory_space<vmem>>, %arg3: memref<8x8xbf16, #tpu.memory_space<vmem>>, %arg4: memref<8x1xf32, #tpu.memory_space<vmem>>, %arg5: memref<1x8x256xf32, #tpu.memory_space<vmem>>, %arg6: memref<1x8x256xf32, #tpu.memory_space<vmem>>) attributes {dimension_semantics = [#tpu.dimension_semantics<parallel>, #tpu.dimension_semantics<parallel>], iteration_bounds = array<i64: 2, 1>, scalar_prefetch = 0 : i64, scratch_operands = 0 : i64, tpu.core_type = #tpu.core_type<tc>, window_params = [{transform_indices = @transform_0, window_bounds = array<i64: 1, 8, 256>}, {pipeline_mode = #tpu.pipeline_mode<synchronous>, transform_indices = @transform_1, window_bounds = array<i64: 8, 8>}, {pipeline_mode = #tpu.pipeline_mode<synchronous>, transform_indices = @transform_2, window_bounds = array<i64: 8, 1>}, {transform_indices = @transform_3, window_bounds = array<i64: 1, 8, 256>}, {transform_indices = @transform_4, window_bounds = array<i64: 1, 8, 256>}]} {
    %c0 = arith.constant 0 : index
    %c0_0 = arith.constant 0 : index
    %0 = vector.load %arg3[%c0, %c0_0] : memref<8x8xbf16, #tpu.memory_space<vmem>>, vector<8x8xbf16>
    %c0_1 = arith.constant 0 : index
    %c0_2 = arith.constant 0 : index
    %c0_3 = arith.constant 0 : index
    %1 = vector.load %arg2[%c0_1, %c0_2, %c0_3] : memref<1x8x256xbf16, #tpu.memory_space<vmem>>, vector<1x8x256xbf16>
    %2 = vector.shape_cast %1 : vector<1x8x256xbf16> to vector<8x256xbf16>
    %cst = arith.constant dense<0.000000e+00> : vector<8x256xf32>
    %3 = tpu.matmul %0, %2, %cst {dimension_numbers = #tpu.dot_dimension_numbers<[1], [0], [0], [1], [0, 0, 1, 1], [], []>} : vector<8x8xbf16>, vector<8x256xbf16>, vector<8x256xf32> -> vector<8x256xf32>
    %c0_4 = arith.constant 0 : index
    %c0_5 = arith.constant 0 : index
    %4 = vector.load %arg4[%c0_4, %c0_5] : memref<8x1xf32, #tpu.memory_space<vmem>>, vector<8x1xf32>
    %5 = vector.broadcast %4 : vector<8x1xf32> to vector<8x256xf32>
    %6 = arith.addf %3, %5 : vector<8x256xf32>
    %c0_6 = arith.constant 0 : index
    %c0_7 = arith.constant 0 : index
    %c0_8 = arith.constant 0 : index
    %7 = vector.load %arg5[%c0_6, %c0_7, %c0_8] : memref<1x8x256xf32, #tpu.memory_space<vmem>>, vector<1x8x256xf32>
    %8 = vector.shape_cast %7 : vector<1x8x256xf32> to vector<8x256xf32>
    %9 = arith.addf %6, %8 : vector<8x256xf32>
    %c0_9 = arith.constant 0 : index
    %c0_10 = arith.constant 0 : index
    %c0_11 = arith.constant 0 : index
    %10 = vector.load %arg6[%c0_9, %c0_10, %c0_11] : memref<1x8x256xf32, #tpu.memory_space<vmem>>, vector<1x8x256xf32>
    %11 = vector.shape_cast %10 : vector<1x8x256xf32> to vector<8x256xf32>
    %12 = vector.shape_cast %9 : vector<8x256xf32> to vector<1x8x256xf32>
    tpu.vector_store %arg6[%c0_9, %c0_10, %c0_11], %12 {strides = array<i32>} : memref<1x8x256xf32, #tpu.memory_space<vmem>>, vector<1x8x256xf32>,
    return
  }
  func.func @transform_0(%arg0: i32, %arg1: i32) -> (i32, i32, i32) {
    %c0_i32 = arith.constant 0 : i32
    %c0_i32_0 = arith.constant 0 : i32
    return %arg0, %c0_i32, %arg1 : i32, i32, i32
  }
  func.func @transform_1(%arg0: i32, %arg1: i32) -> (i32, i32) {
    %c0_i32 = arith.constant 0 : i32
    %c0_i32_0 = arith.constant 0 : i32
    %c0_i32_1 = arith.constant 0 : i32
    return %c0_i32, %c0_i32_0 : i32, i32
  }
  func.func @transform_2(%arg0: i32, %arg1: i32) -> (i32, i32) {
    %c0_i32 = arith.constant 0 : i32
    %c0_i32_0 = arith.constant 0 : i32
    %c0_i32_1 = arith.constant 0 : i32
    return %c0_i32, %c0_i32_0 : i32, i32
  }
  func.func @transform_3(%arg0: i32, %arg1: i32) -> (i32, i32, i32) {
    %c0_i32 = arith.constant 0 : i32
    %c0_i32_0 = arith.constant 0 : i32
    return %arg0, %c0_i32, %arg1 : i32, i32, i32
  }
  func.func @transform_4(%arg0: i32, %arg1: i32) -> (i32, i32, i32) {
    %c0_i32 = arith.constant 0 : i32
    %c0_i32_0 = arith.constant 0 : i32
    return %arg0, %c0_i32, %arg1 : i32, i32, i32
  }
}

</mosaic_0001>

<bundles_post_ra>
// kernel: basicgrap_forward.9
= control target key start
LH: loop header
LB: loop body
LE: loop exit
PB: predicated region body
PF: predicated region fallthrough
CT: control target
= control target key end

     0   :  { %s448_s12 = smov 0   ;;  %s450_s13 = smov 0   ;;  %s490_s0 = inlined_call_operand.vmem [shape: bf16[2,8,128], index: 0, kind: input, shape index: {}]   ;;  %s491_s1 = inlined_call_operand.vmem [shape: bf16[16,8], index: 1, kind: input, shape index: {}]   ;;  %s492_s2 = inlined_call_operand.vmem [shape: f32[16,1], index: 2, kind: input, shape index: {}]   ;;  %s493_s3 = inlined_call_operand.vmem [shape: f32[2,16,128], index: 3, kind: output, shape index: {}]  }
   0x1   :  { %s452_s14 = smov 0  }
   0x2 LB: > { %s25_s15 = sadd.s32 1, %s419_s13  ;;  %p355_p0 = scmp.ge.s32.totalorder %s423_s14, 1  ;;  %s423_s14 = sphi %s452_s14, %s13_s14   ;;  %s419_s13 = sphi %s450_s13, %s495_s13   ;;  %s415_s12 = sphi %s448_s12, %s494_s12  }
   0x3   : > { %p27_p1 = scmp.ge.s32.totalorder %s25_s15, 2  ;;  %p155_p2 = scmp.lt.s32.totalorder %s423_s14, 3 }
   0x5   : > { %s497_s15 = smov (%p27_p1, %s25_s15), 0  ;;  %p156_p3 = pnand %p355_p0, %p155_p2 }
   0x6   : > { %p184_p4 = scmp.lt.s32.totalorder (!%p156_p3), %s415_s12, 1  ;;  %v425_v0 = vmov (!%p156_p3), 0.0   ;;  %vm426_vm0 = vmmov (!%p156_p3), 0   ;;  %v203_v1 = vld [vmem:[%s492_s2] sm:$0xff] (!%p156_p3)  ;;  %v427_v2 = vmov (!%p156_p3), 0   ;;  %vm224_vm1 = vcmask (!%p156_p3), 1043456  }
   0x7   : > { %159 = sbr.rel (%p156_p3) target bundleno = 239 (0xef), region = 32  ;;  %366 = vmatprep.subr.bf16.mxu0 (!%p156_p3), %v425_v0  ;;  %368 = vmatprep.mubr.msk.bf16.mxu0 (!%p156_p3), %vm426_vm0, %v425_v0  ;;  %v204_v3 = vld [vmem:[%s492_s2 + $0x8] sm:$0xff] (!%p156_p3)  ;;  %v400_v6 = vld [vmem:[%s491_s1] sm:$0xff] (!%p156_p3)   ;;  %vm220_vm2 = vcmask (!%p156_p3), 64512  }
   0x8   : > { %399 = vset.pattern.permute.xlu0 (!%p156_p3), %v427_v2 }
   0x9   : > { %207 = vperm.xlu0 (!%p156_p3), %399, %v203_v1  }
   0xd   : > { %212 = vperm.xlu0 (!%p156_p3), %399, %v204_v3  }
   0xe   : > { %s499_s12 = smov (!%p184_p4, %s415_s12), 1 }
   0xf   : > { %s356_s18 = sshll.u32 %s499_s12, 2  ;;  %s363_s26 = sshll.u32 %s499_s12, 4 }
  0x10   : > { %s190_s23 = scalar_lea.vmem %s490_s0, %s356_s18  ;;  %s198_s29 = scalar_lea.vmem %s493_s3, %s363_s26 }
  0x11   : > { %v202_v4 = vld [vmem:[%s190_s23] sm:$0xf] }
  0x12   : > { %v226_v5 = vsel %vm224_vm1, %v202_v4, 0 }
  0x13   : > { %367 = vmatpush3.bf16.msra.mxu0 %v226_v5 }
  0x16   : > { %369 = vmatmul.mubr.msk.bf16.vlgmr.msra.gmra.mrb[0].mxu0 %vm220_vm2, %v400_v6 }
  0x88   : > { %v208_v7 = vpop.permute.xlu0 %207 }
  0x8c   : > { %v213_v11 = vpop.permute.xlu0 %212 }
  0xe9   : > { %v262_v8 = vpop.f32.mrb[0].mxu0 }
  0xea   : > { %v263_v9 = vadd.f32 %v262_v8, %v208_v7  ;;  %v370_v10 = vpop.f32.mrb[1].mxu0 }
  0xeb   : > { %v265_v12 = vpop.f32.mrb[2].mxu0 }
  0xec   : > { %269 = vst [vmem:[%s198_s29] sm:$0xff] %v263_v9  ;;  %v266_v13 = vadd.f32 %v265_v12, %v213_v11  ;;  %v371_v14 = vpop.f32.mrb[3].mxu0 }
  0xee   : > { %270 = vst [vmem:[%s198_s29 + $0x8] sm:$0xff] %v266_v13 }
  0xef PF: > { %s13_s14 = sadd.s32 1, %s423_s14   ;;  %s494_s12 = smov %s419_s13 }
  0xf0   : > { %p10_p5 = scmp.ge.s32.totalorder %s13_s14, 4   ;;  %s495_s13 = smov %s497_s15 }
  0xf2   :  { %12 = sbr.rel (!%p10_p5) target bundleno = 2 (0x2), region = 62 }

// kernel: basicgrap_forward.11
= control target key start
LH: loop header
LB: loop body
LE: loop exit
PB: predicated region body
PF: predicated region fallthrough
CT: control target
= control target key end

     0   :  { %s461_s12 = smov 0   ;;  %s463_s13 = smov 0   ;;  %s503_s0 = inlined_call_operand.vmem [shape: bf16[2,16,128], index: 0, kind: input, shape index: {}]   ;;  %s504_s1 = inlined_call_operand.vmem [shape: bf16[16,16], index: 1, kind: input, shape index: {}]   ;;  %s505_s2 = inlined_call_operand.vmem [shape: f32[16,1], index: 2, kind: input, shape index: {}]   ;;  %s506_s3 = inlined_call_operand.vmem [shape: f32[2,16,128], index: 3, kind: output, shape index: {}]  }
   0x1   :  { %s465_s14 = smov 0  }
   0x2 LB: > { %s25_s15 = sadd.s32 1, %s432_s13  ;;  %p364_p0 = scmp.ge.s32.totalorder %s436_s14, 1  ;;  %s436_s14 = sphi %s465_s14, %s13_s14   ;;  %s432_s13 = sphi %s463_s13, %s508_s13   ;;  %s428_s12 = sphi %s461_s12, %s507_s12  }
   0x3   : > { %p27_p1 = scmp.ge.s32.totalorder %s25_s15, 2  ;;  %p156_p2 = scmp.lt.s32.totalorder %s436_s14, 3 }
   0x5   : > { %s510_s15 = smov (%p27_p1, %s25_s15), 0  ;;  %p157_p3 = pnand %p364_p0, %p156_p2 }
   0x6   : > { %p186_p4 = scmp.lt.s32.totalorder (!%p157_p3), %s428_s12, 1  ;;  %v438_v0 = vmov (!%p157_p3), 0.0   ;;  %vm439_vm0 = vmmov (!%p157_p3), 0   ;;  %v207_v1 = vld [vmem:[%s505_s2] sm:$0xff] (!%p157_p3)  ;;  %v440_v2 = vmov (!%p157_p3), 0   ;;  %v208_v3 = vld [vmem:[%s505_s2 + $0x8] sm:$0xff] (!%p157_p3) }
   0x7   : > { %160 = sbr.rel (%p157_p3) target bundleno = 238 (0xee), region = 32  ;;  %378 = vmatprep.subr.bf16.mxu0 (!%p157_p3), %v438_v0  ;;  %380 = vmatprep.mubr.msk.bf16.mxu0 (!%p157_p3), %vm439_vm0, %v438_v0  ;;  %v413_v5 = vld [vmem:[%s504_s1] sm:$0xff] (!%p157_p3)   ;;  %vm230_vm1 = vcmask (!%p157_p3), 130048  }
   0x8   : > { %411 = vset.pattern.permute.xlu0 (!%p157_p3), %v440_v2 }
   0x9   : > { %211 = vperm.xlu0 (!%p157_p3), %411, %v207_v1  }
   0xd   : > { %216 = vperm.xlu0 (!%p157_p3), %411, %v208_v3  }
   0xe   : > { %s512_s12 = smov (!%p186_p4, %s428_s12), 1 }
   0xf   : > { %s374_s18 = sshll.u32 %s512_s12, 3  ;;  %s375_s26 = sshll.u32 %s512_s12, 4 }
  0x10   : > { %s193_s23 = scalar_lea.vmem %s503_s0, %s374_s18  ;;  %s201_s29 = scalar_lea.vmem %s506_s3, %s375_s26 }
  0x11   : > { %v412_v4 = vld [vmem:[%s193_s23] sm:$0xff]  }
  0x12   : > { %379 = vmatpush3.bf16.msra.mxu0 %v412_v4 }
  0x15   : > { %381 = vmatmul.mubr.msk.bf16.vlgmr.msra.gmra.mrb[0].mxu0 %vm230_vm1, %v413_v5 }
  0x88   : > { %v212_v6 = vpop.permute.xlu0 %211 }
  0x8c   : > { %v217_v10 = vpop.permute.xlu0 %216 }
  0xe8   : > { %v268_v7 = vpop.f32.mrb[0].mxu0 }
  0xe9   : > { %v269_v8 = vadd.f32 %v268_v7, %v212_v6  ;;  %v382_v9 = vpop.f32.mrb[1].mxu0 }
  0xea   : > { %v271_v11 = vpop.f32.mrb[2].mxu0 }
  0xeb   : > { %275 = vst [vmem:[%s201_s29] sm:$0xff] %v269_v8  ;;  %v272_v12 = vadd.f32 %v271_v11, %v217_v10  ;;  %v383_v13 = vpop.f32.mrb[3].mxu0 }
  0xed   : > { %276 = vst [vmem:[%s201_s29 + $0x8] sm:$0xff] %v272_v12 }
  0xee PF: > { %s13_s14 = sadd.s32 1, %s436_s14   ;;  %s507_s12 = smov %s432_s13 }
  0xef   : > { %p10_p5 = scmp.ge.s32.totalorder %s13_s14, 4   ;;  %s508_s13 = smov %s510_s15 }
  0xf1   :  { %12 = sbr.rel (!%p10_p5) target bundleno = 2 (0x2), region = 62 }

// kernel: basicgrap_forward.10
= control target key start
LH: loop header
LB: loop body
LE: loop exit
PB: predicated region body
PF: predicated region fallthrough
CT: control target
= control target key end

     0   :  { %s535_s12 = smov 0   ;;  %s537_s13 = smov 0   ;;  %s584_s0 = inlined_call_operand.vmem [shape: bf16[2,144,128], index: 0, kind: input, shape index: {}]   ;;  %s585_s1 = inlined_call_operand.vmem [shape: bf16[16,144], index: 1, kind: input, shape index: {}]   ;;  %s586_s2 = inlined_call_operand.vmem [shape: f32[16,1], index: 2, kind: input, shape index: {}]   ;;  %s587_s3 = inlined_call_operand.vmem [shape: f32[2,16,128], index: 3, kind: output, shape index: {}]  }
   0x1   :  { %s539_s14 = smov 0  }
   0x2 LB: > { %s25_s15 = sadd.s32 1, %s508_s13  ;;  %p432_p0 = scmp.ge.s32.totalorder %s512_s14, 1  ;;  %s512_s14 = sphi %s539_s14, %s13_s14   ;;  %s508_s13 = sphi %s537_s13, %s589_s13   ;;  %s504_s12 = sphi %s535_s12, %s588_s12  }
   0x3   : > { %p27_p1 = scmp.ge.s32.totalorder %s25_s15, 2  ;;  %p156_p2 = scmp.lt.s32.totalorder %s512_s14, 3 }
   0x5   : > { %s591_s15 = smov (%p27_p1, %s25_s15), 0  ;;  %p157_p3 = pnand %p432_p0, %p156_p2 }
   0x6   : > { %p186_p4 = scmp.lt.s32.totalorder (!%p157_p3), %s504_s12, 1  ;;  %v514_v0 = vmov (!%p157_p3), 0   ;;  %v489_v1 = vld [vmem:[%s585_s1 + $0x4] ss:$8 sps:$4 sm:$0xff] (!%p157_p3)   ;;  %vm298_vm0 = vcmask (!%p157_p3), 130048  }
   0x7   : > { %160 = sbr.rel (%p157_p3) target bundleno = 271 (0x10f), region = 32  ;;  %302 = vmatprep.subr.bf16.mxu0 (!%p157_p3), %v514_v0  ;;  %477 = vset.pattern.permute.xlu0 (!%p157_p3), %v514_v0  ;;  %v223_v2 = vld [vmem:[%s586_s2] sm:$0xff] (!%p157_p3)  ;;  %v224_v3 = vld [vmem:[%s586_s2 + $0x8] sm:$0xff] (!%p157_p3) }
   0x8   : > { %227 = vperm.xlu0 (!%p157_p3), %477, %v223_v2   ;;  %447 = vmatprep.mubr.msk.bf16.mxu0 (!%p157_p3), %vm298_vm0, %v489_v1  ;;  %v487_v13 = vld [vmem:[%s585_s1] ss:$8 sps:$4 sm:$0xff] (!%p157_p3)  }
   0xc   : > { %232 = vperm.xlu0 (!%p157_p3), %477, %v224_v3  }
   0xe   : > { %s593_s12 = smov (!%p186_p4, %s504_s12), 1 }
   0xf   : > { %s451_s22 = smul.u32 72, %s593_s12  ;;  %s450_s28 = sshll.u32 %s593_s12, 4 }
  0x10   : > { %s201_s4 = scalar_lea.vmem %s587_s3, %s450_s28 }
  0x11   : > { %s193_s25 = scalar_lea.vmem %s584_s0, %s451_s22 }
  0x12   : > { %v478_v4 = vld [vmem:[%s193_s25] sm:$0xff]   ;;  %v479_v5 = vld [vmem:[%s193_s25 + $0x8] sm:$0xff]   ;;  %v480_v6 = vld [vmem:[%s193_s25 + $0x10] sm:$0xff]  }
  0x13   : > { %303 = vmatpush1.bf16.msra.mxu0 %v478_v4  ;;  %v481_v7 = vld [vmem:[%s193_s25 + $0x18] sm:$0xff]   ;;  %v482_v8 = vld [vmem:[%s193_s25 + $0x20] sm:$0xff]   ;;  %v483_v9 = vld [vmem:[%s193_s25 + $0x28] sm:$0xff]  }
  0x14   : > { %304 = vmatprep.subr.bf16.mxu0 %v514_v0  ;;  %v484_v10 = vld [vmem:[%s193_s25 + $0x30] sm:$0xff]   ;;  %v485_v11 = vld [vmem:[%s193_s25 + $0x38] sm:$0xff]   ;;  %v486_v12 = vld [vmem:[%s193_s25 + $0x40] sm:$0xff]  }
  0x17   : > { %305 = vmatpush1.bf16.msra.mxu0 %v479_v5 }
  0x18   : > { %306 = vmatprep.subr.bf16.mxu0 %v514_v0 }
  0x1b   : > { %307 = vmatpush1.bf16.msra.mxu0 %v480_v6 }
  0x1c   : > { %308 = vmatprep.subr.bf16.mxu0 %v514_v0 }
  0x1f   : > { %309 = vmatpush1.bf16.msra.mxu0 %v481_v7 }
  0x20   : > { %310 = vmatprep.subr.bf16.mxu0 %v514_v0 }
  0x23   : > { %311 = vmatpush1.bf16.msra.mxu0 %v482_v8 }
  0x24   : > { %312 = vmatprep.subr.bf16.mxu0 %v514_v0 }
  0x27   : > { %313 = vmatpush1.bf16.msra.mxu0 %v483_v9 }
  0x28   : > { %314 = vmatprep.subr.bf16.mxu0 %v514_v0 }
  0x2b   : > { %315 = vmatpush1.bf16.msra.mxu0 %v484_v10 }
  0x2c   : > { %316 = vmatprep.subr.bf16.mxu0 %v514_v0 }
  0x2f   : > { %317 = vmatpush1.bf16.msra.mxu0 %v485_v11 }
  0x30   : > { %318 = vmatprep.subr.bf16.mxu0 %v514_v0 }
  0x33   : > { %319 = vmatpush1.bf16.msra.mxu0 %v486_v12 }
  0x36   : > { %335 = vmatmul.mubr.bf16.vlgmr.msra.gmra.mrb[0].mxu0 %v487_v13 }
  0x87   : > { %v228_v14 = vpop.permute.xlu0 %227 }
  0x8b   : > { %v233_v18 = vpop.permute.xlu0 %232 }
 0x109   : > { %v336_v15 = vpop.f32.mrb[0].mxu0 }
 0x10a   : > { %v337_v16 = vadd.f32 %v336_v15, %v228_v14  ;;  %v338_v17 = vpop.f32.mrb[1].mxu0 }
 0x10b   : > { %v339_v19 = vpop.f32.mrb[2].mxu0 }
 0x10c   : > { %343 = vst [vmem:[%s201_s4] sm:$0xff] %v337_v16  ;;  %v340_v20 = vadd.f32 %v339_v19, %v233_v18  ;;  %v341_v21 = vpop.f32.mrb[3].mxu0 }
 0x10e   : > { %344 = vst [vmem:[%s201_s4 + $0x8] sm:$0xff] %v340_v20 }
 0x10f PF: > { %s13_s14 = sadd.s32 1, %s512_s14   ;;  %s588_s12 = smov %s508_s13 }
 0x110   : > { %p10_p5 = scmp.ge.s32.totalorder %s13_s14, 4   ;;  %s589_s13 = smov %s591_s15 }
 0x112   :  { %12 = sbr.rel (!%p10_p5) target bundleno = 2 (0x2), region = 62 }

// kernel: basicgrap_forward.13
= control target key start
LH: loop header
LB: loop body
LE: loop exit
PB: predicated region body
PF: predicated region fallthrough
CT: control target
= control target key end

     0   :  { %s978_s12 = smov 0   ;;  %s980_s13 = smov 0   ;;  %s1073_s0 = inlined_call_operand.vmem [shape: bf16[4,2,64,256], index: 0, kind: input, shape index: {}]   ;;  %s1074_s1 = inlined_call_operand.vmem [shape: bf16[4,256,128], index: 1, kind: input, shape index: {}]   ;;  %s1075_s2 = inlined_call_operand.vmem [shape: f32[4,1,128], index: 2, kind: input, shape index: {}]   ;;  %s1076_s3 = inlined_call_operand.vmem [shape: bf16[4,2,64,128], index: 3, kind: output, shape index: {}]  }
   0x1   :  { %s982_s14 = smov 0   ;;  %s984_s15 = smov 0  }
   0x2   :  { %s986_s16 = smov 0  }
   0x3 LB: > { %s28_s17 = sadd.s32 1, %s948_s14  ;;  %s32_s18 = sadd.s32 1, %s952_s15  ;;  %s956_s16 = sphi %s986_s16, %s13_s16   ;;  %s952_s15 = sphi %s984_s15, %s1080_s15   ;;  %s948_s14 = sphi %s982_s14, %s1079_s14   ;;  %s944_s13 = sphi %s980_s13, %s1078_s13   ;;  %s940_s12 = sphi %s978_s12, %s1077_s12  }
   0x4   : > { %p30_p0 = scmp.ge.s32.totalorder %s28_s17, 2  ;;  %p718_p1 = scmp.ge.s32.totalorder %s956_s16, 1 }
   0x5   : > { %p192_p2 = scmp.lt.s32.totalorder %s956_s16, 9 }
   0x6   : > { %s1082_s17 = smov (%p30_p0, %s28_s17), 0  ;;  %s1084_s18 = smov (!%p30_p0, %s32_s18), %s952_s15 }
   0x7   : > { %p193_p3 = pnand %p718_p1, %p192_p2  ;;  %p34_p4 = scmp.ge.s32.totalorder %s1084_s18, 4 }
   0x8   : > { %p242_p5 = scmp.lt.s32.totalorder (!%p193_p3), %s944_s13, 3  ;;  %p244_p6 = scmp.lt.s32.totalorder (!%p193_p3), %s940_s12, 1 }
   0x9   : > { %s1086_s18 = smov (%p34_p4, %s1084_s18), 0  ;;  %196 = sbr.rel (%p193_p3) target bundleno = 285 (0x11d), region = 32 }
  0x10   : > { %s1088_s13 = smov (!%p242_p5, %s944_s13), 3  ;;  %s1090_s12 = smov (!%p244_p6, %s940_s12), 1 }
  0x11   : > { %s762_s19 = sshll.u32 %s1088_s13, 7  ;;  %s719_s23 = sshll.u32 %s1090_s12, 4 }
  0x12   : > { %s1014_s22 = scalar_lea.vmem %s1074_s1, %s762_s19  ;;  %s720_s24 = sshll.u32 %s1088_s13, 5 }
  0x13   : > { %v890_v0 = vld [vmem:[%s1014_s22 + $0x40] sm:$0xff]   ;;  %v892_v2 = vld [vmem:[%s1014_s22 + $0x48] sm:$0xff]   ;;  %v894_v4 = vld [vmem:[%s1014_s22 + $0x50] sm:$0xff]   ;;  %s252_s25 = sadd.s32 %s720_s24, %s719_s23  ;;  %s263_s5 = scalar_lea.vmem %s1075_s2, %s1088_s13 }
  0x14   : > { %v891_v1 = vld [vmem:[%s1014_s22] sm:$0xff]   ;;  %794 = vmatprep.subr.bf16.mxu0 %v890_v0  ;;  %834 = vmatprep.subr.bf16.mxu1 %v890_v0  ;;  %v893_v3 = vld [vmem:[%s1014_s22 + $0x8] sm:$0xff]   ;;  %v895_v5 = vld [vmem:[%s1014_s22 + $0x10] sm:$0xff]   ;;  %s721_s26 = sshll.u32 %s252_s25, 2  ;;  %s724_s6 = sshll.u32 %s1090_s12, 3 }
  0x15   : > { %795 = vmatpush3.bf16.msra.mxu0 %v891_v1  ;;  %842 = vmatpush3.bf16.msra.mxu1 %v891_v1  ;;  %v896_v6 = vld [vmem:[%s1014_s22 + $0x58] sm:$0xff]   ;;  %v898_v8 = vld [vmem:[%s1014_s22 + $0x60] sm:$0xff]   ;;  %s1032_s29 = scalar_lea.vmem %s1073_s0, %s721_s26  ;;  %v900_v10 = vld [vmem:[%s1014_s22 + $0x68] sm:$0xff]   ;;  %s725_s7 = sshll.u32 %s1088_s13, 4 }
  0x16   : > { %796 = vmatprep.subr.bf16.mxu0 %v892_v2  ;;  %835 = vmatprep.subr.bf16.mxu1 %v892_v2  ;;  %v897_v7 = vld [vmem:[%s1014_s22 + $0x18] sm:$0xff]   ;;  %v899_v9 = vld [vmem:[%s1014_s22 + $0x20] sm:$0xff]   ;;  %v901_v13 = vld [vmem:[%s1014_s22 + $0x28] sm:$0xff]   ;;  %s274_s8 = sadd.s32 %s725_s7, %s724_s6 }
  0x17   : > { %v908_v11 = vld [vmem:[%s1032_s29 + $0x4] ss:$8 sps:$4 sm:$0xff]   ;;  %v902_v14 = vld [vmem:[%s1014_s22 + $0x70] sm:$0xff]   ;;  %v904_v16 = vld [vmem:[%s1014_s22 + $0x78] sm:$0xff]   ;;  %s726_s9 = sshll.u32 %s274_s8, 2 }
  0x18   : > { %v911_v12 = vld [vmem:[%s1032_s29 + $0x24] ss:$8 sps:$4 sm:$0xff]   ;;  %494 = vmatprep.mubr.bf16.mxu0 %v908_v11  ;;  %v903_v15 = vld [vmem:[%s1014_s22 + $0x30] sm:$0xff]   ;;  %v905_v17 = vld [vmem:[%s1014_s22 + $0x38] sm:$0xff]   ;;  %s276_s12 = scalar_lea.vmem %s1076_s3, %s726_s9 }
  0x19   : > { %797 = vmatpush3.bf16.msra.mxu0 %v893_v3  ;;  %843 = vmatpush3.bf16.msra.mxu1 %v893_v3  ;;  %v906_v18 = vld [vmem:[%s1032_s29] ss:$8 sps:$4 sm:$0xff]   ;;  %v912_v20 = vld [vmem:[%s1032_s29 + $0x14] ss:$8 sps:$4 sm:$0xff]   ;;  %v916_v22 = vld [vmem:[%s1032_s29 + $0x10] ss:$8 sps:$4 sm:$0xff]  }
  0x1a   : > { %798 = vmatprep.subr.bf16.mxu0 %v894_v4  ;;  %836 = vmatprep.subr.bf16.mxu1 %v894_v4  ;;  %v909_v19 = vld [vmem:[%s1032_s29 + $0x20] ss:$8 sps:$4 sm:$0xff]   ;;  %v914_v21 = vld [vmem:[%s1032_s29 + $0x34] ss:$8 sps:$4 sm:$0xff]   ;;  %v917_v23 = vld [vmem:[%s1032_s29 + $0x30] ss:$8 sps:$4 sm:$0xff]  }
  0x1b   : > { %510 = vmatprep.mubr.bf16.mxu1 %v911_v12  ;;  %v727_v26 = vld [vmem:[%s263_s5] ss:$0 sm:$0xff] }
  0x1d   : > { %799 = vmatpush3.bf16.msra.mxu0 %v895_v5  ;;  %844 = vmatpush3.bf16.msra.mxu1 %v895_v5 }
  0x1e   : > { %800 = vmatprep.subr.bf16.mxu0 %v896_v6  ;;  %837 = vmatprep.subr.bf16.mxu1 %v896_v6 }
  0x21   : > { %801 = vmatpush3.bf16.msra.mxu0 %v897_v7  ;;  %845 = vmatpush3.bf16.msra.mxu1 %v897_v7 }
  0x22   : > { %802 = vmatprep.subr.bf16.mxu0 %v898_v8  ;;  %838 = vmatprep.subr.bf16.mxu1 %v898_v8 }
  0x25   : > { %803 = vmatpush3.bf16.msra.mxu0 %v899_v9  ;;  %846 = vmatpush3.bf16.msra.mxu1 %v899_v9 }
  0x26   : > { %804 = vmatprep.subr.bf16.mxu0 %v900_v10  ;;  %839 = vmatprep.subr.bf16.mxu1 %v900_v10 }
  0x29   : > { %805 = vmatpush3.bf16.msra.mxu0 %v901_v13  ;;  %847 = vmatpush3.bf16.msra.mxu1 %v901_v13 }
  0x2a   : > { %806 = vmatprep.subr.bf16.mxu0 %v902_v14  ;;  %840 = vmatprep.subr.bf16.mxu1 %v902_v14 }
  0x2d   : > { %807 = vmatpush3.bf16.msra.mxu0 %v903_v15  ;;  %848 = vmatpush3.bf16.msra.mxu1 %v903_v15 }
  0x2e   : > { %808 = vmatprep.subr.bf16.mxu0 %v904_v16  ;;  %841 = vmatprep.subr.bf16.mxu1 %v904_v16 }
  0x31   : > { %809 = vmatpush3.bf16.msra.mxu0 %v905_v17  ;;  %849 = vmatpush3.bf16.msra.mxu1 %v905_v17 }
  0x34   : > { %495 = vmatmul.mubr.bf16.vlgmr.msra.gmra.mrb[0].mxu0 %v906_v18  ;;  %511 = vmatmul.mubr.bf16.vlgmr.msra.gmra.mrb[0].mxu1 %v909_v19 }
  0x35   : > { %502 = vmatprep.mubr.bf16.mxu0 %v912_v20  ;;  %518 = vmatprep.mubr.bf16.mxu1 %v914_v21 }
  0x3c   : > { %503 = vmatmul.mubr.bf16.gmra.mrb[4].mxu0 %v916_v22  ;;  %519 = vmatmul.mubr.bf16.gmra.mrb[4].mxu1 %v917_v23 }
 0x107   : > { %v810_v24 = vpop.f32.mrb[0].mxu0  ;;  %v822_v25 = vpop.f32.mrb[0].mxu1 }
 0x108   : > { %v811_v27 = vpop.f32.mrb[1].mxu0  ;;  %v823_v28 = vpop.f32.mrb[1].mxu1 }
 0x109   : > { %v812_v29 = vadd.f32 %v811_v27, %v810_v24  ;;  %v824_v30 = vadd.f32 %v823_v28, %v822_v25  ;;  %v813_v31 = vpop.f32.mrb[2].mxu0  ;;  %v825_v32 = vpop.f32.mrb[2].mxu1 }
 0x10a   : > { %v814_v33 = vpop.f32.mrb[3].mxu0  ;;  %v826_v34 = vpop.f32.mrb[3].mxu1 }
 0x10b   : > { %v497_v35 = vadd.f32 %v812_v29, %v727_v26  ;;  %v513_v36 = vadd.f32 %v824_v30, %v727_v26  ;;  %v815_v37 = vadd.f32 %v814_v33, %v813_v31  ;;  %v827_v38 = vadd.f32 %v826_v34, %v825_v32 }
 0x10d   : > { %v500_v39 = vadd.f32 %v815_v37, %v727_v26  ;;  %v516_v40 = vadd.f32 %v827_v38, %v727_v26  ;;  %v527_v41 = vmax.f32 %v497_v35, 0.0  ;;  %v531_v42 = vmax.f32 %v513_v36, 0.0 }
 0x10f   : > { %v528_v43 = vmax.f32 %v500_v39, 0.0  ;;  %v532_v44 = vmax.f32 %v516_v40, 0.0  ;;  %v816_v45 = vpop.f32.mrb[4].mxu0  ;;  %v828_v46 = vpop.f32.mrb[4].mxu1 }
 0x110   : > { %v817_v47 = vpop.f32.mrb[5].mxu0  ;;  %v829_v48 = vpop.f32.mrb[5].mxu1 }
 0x111   : > { %v774_v49 = vpack.c.bf16 %v528_v43, %v527_v41  ;;  %v784_v50 = vpack.c.bf16 %v532_v44, %v531_v42  ;;  %v818_v51 = vadd.f32 %v817_v47, %v816_v45  ;;  %v830_v52 = vadd.f32 %v829_v48, %v828_v46  ;;  %v819_v53 = vpop.f32.mrb[6].mxu0  ;;  %v831_v54 = vpop.f32.mrb[6].mxu1 }
 0x112   : > { %v820_v55 = vpop.f32.mrb[7].mxu0  ;;  %v832_v56 = vpop.f32.mrb[7].mxu1 }
 0x113   : > { %775 = vst [vmem:[%s276_s12] sm:$0xff] %v774_v49   ;;  %792 = vst [vmem:[%s276_s12 + $0x10] sm:$0xff] %v784_v50   ;;  %v505_v57 = vadd.f32 %v818_v51, %v727_v26  ;;  %v521_v58 = vadd.f32 %v830_v52, %v727_v26  ;;  %v821_v59 = vadd.f32 %v820_v55, %v819_v53 }
 0x114   : > { %v833_v60 = vadd.f32 %v832_v56, %v831_v54 }
 0x115   : > { %v508_v61 = vadd.f32 %v821_v59, %v727_v26  ;;  %v529_v63 = vmax.f32 %v505_v57, 0.0  ;;  %v533_v0 = vmax.f32 %v521_v58, 0.0 }
 0x116   : > { %v524_v62 = vadd.f32 %v833_v60, %v727_v26 }
 0x117   : > { %v530_v1 = vmax.f32 %v508_v61, 0.0 }
 0x118   : > { %v534_v2 = vmax.f32 %v524_v62, 0.0 }
 0x119   : > { %v779_v3 = vpack.c.bf16 %v530_v1, %v529_v63 }
 0x11a   : > { %v789_v4 = vpack.c.bf16 %v534_v2, %v533_v0 }
 0x11b   : > { %791 = vst [vmem:[%s276_s12 + $0x8] sm:$0xff] %v779_v3  }
 0x11c   : > { %793 = vst [vmem:[%s276_s12 + $0x18] sm:$0xff] %v789_v4  }
 0x11d PF: > { %s13_s16 = sadd.s32 1, %s956_s16   ;;  %s1077_s12 = smov %s948_s14 }
 0x11e   : > { %p10_p7 = scmp.ge.s32.totalorder %s13_s16, 10   ;;  %s1078_s13 = smov %s952_s15 }
 0x11f   : > { %s1079_s14 = smov %s1082_s17  ;;  %s1080_s15 = smov %s1086_s18 }
 0x120   :  { %12 = sbr.rel (!%p10_p7) target bundleno = 3 (0x3), region = 68 }

// kernel: basicgrap_forward.12
= control target key start
LH: loop header
LB: loop body
LE: loop exit
PB: predicated region body
PF: predicated region fallthrough
CT: control target
= control target key end

     0   :  { %s759_s12 = smov 0   ;;  %s761_s13 = smov 0   ;;  %s844_s0 = inlined_call_operand.vmem [shape: bf16[4,2,4,256], index: 0, kind: input, shape index: {}]   ;;  %s845_s1 = inlined_call_operand.vmem [shape: bf16[4,256,128], index: 1, kind: input, shape index: {}]   ;;  %s846_s2 = inlined_call_operand.vmem [shape: f32[4,1,128], index: 2, kind: input, shape index: {}]   ;;  %s847_s3 = inlined_call_operand.vmem [shape: bf16[4,2,4,128], index: 3, kind: output, shape index: {}]  }
   0x1   :  { %s763_s14 = smov 0   ;;  %s765_s15 = smov 0  }
   0x2   :  { %s767_s16 = smov 0  }
   0x3 LB: > { %s28_s17 = sadd.s32 1, %s729_s14  ;;  %s32_s18 = sadd.s32 1, %s733_s15  ;;  %s737_s16 = sphi %s767_s16, %s13_s16   ;;  %s733_s15 = sphi %s765_s15, %s851_s15   ;;  %s729_s14 = sphi %s763_s14, %s850_s14   ;;  %s725_s13 = sphi %s761_s13, %s849_s13   ;;  %s721_s12 = sphi %s759_s12, %s848_s12  }
   0x4   : > { %p30_p0 = scmp.ge.s32.totalorder %s28_s17, 2  ;;  %p592_p1 = scmp.ge.s32.totalorder %s737_s16, 1 }
   0x5   : > { %p190_p2 = scmp.lt.s32.totalorder %s737_s16, 9 }
   0x6   : > { %s853_s17 = smov (%p30_p0, %s28_s17), 0  ;;  %s855_s18 = smov (!%p30_p0, %s32_s18), %s733_s15 }
   0x7   : > { %p191_p3 = pnand %p592_p1, %p190_p2  ;;  %p34_p4 = scmp.ge.s32.totalorder %s855_s18, 4 }
   0x8   : > { %p236_p5 = scmp.lt.s32.totalorder (!%p191_p3), %s725_s13, 3  ;;  %p238_p6 = scmp.lt.s32.totalorder (!%p191_p3), %s721_s12, 1 }
   0x9   : > { %s857_s18 = smov (%p34_p4, %s855_s18), 0  ;;  %194 = sbr.rel (%p191_p3) target bundleno = 274 (0x112), region = 32 }
  0x10   : > { %s859_s13 = smov (!%p236_p5, %s725_s13), 3  ;;  %s861_s12 = smov (!%p238_p6, %s721_s12), 1 }
  0x11   : > { %s620_s19 = sshll.u32 %s859_s13, 7  ;;  %s594_s23 = sshll.u32 %s859_s13, 2 }
  0x12   : > { %s795_s22 = scalar_lea.vmem %s845_s1, %s620_s19  ;;  %s593_s24 = sshll.u32 %s861_s12, 1 }
  0x13   : > { %v683_v0 = vld [vmem:[%s795_s22 + $0x40] sm:$0xff]   ;;  %v685_v2 = vld [vmem:[%s795_s22 + $0x48] sm:$0xff]   ;;  %v687_v4 = vld [vmem:[%s795_s22 + $0x50] sm:$0xff]   ;;  %s246_s25 = sadd.s32 %s594_s23, %s593_s24  ;;  %s598_s30 = sshll.u32 %s859_s13, 1 }
  0x14   : > { %v684_v1 = vld [vmem:[%s795_s22] sm:$0xff]   ;;  %621 = vmatprep.subr.bf16.mxu0 %v683_v0  ;;  %v686_v3 = vld [vmem:[%s795_s22 + $0x8] sm:$0xff]   ;;  %v688_v5 = vld [vmem:[%s795_s22 + $0x10] sm:$0xff]   ;;  %s595_s26 = sshll.u32 %s246_s25, 1  ;;  %s256_s6 = scalar_lea.vmem %s846_s2, %s859_s13 }
  0x15   : > { %622 = vmatpush3.bf16.msra.mxu0 %v684_v1  ;;  %v689_v6 = vld [vmem:[%s795_s22 + $0x58] sm:$0xff]   ;;  %v691_v8 = vld [vmem:[%s795_s22 + $0x60] sm:$0xff]   ;;  %s248_s29 = scalar_lea.vmem %s844_s0, %s595_s26  ;;  %v693_v10 = vld [vmem:[%s795_s22 + $0x68] sm:$0xff]   ;;  %s265_s7 = sadd.s32 %s598_s30, %s861_s12 }
  0x16   : > { %623 = vmatprep.subr.bf16.mxu0 %v685_v2  ;;  %v690_v7 = vld [vmem:[%s795_s22 + $0x18] sm:$0xff]   ;;  %v692_v9 = vld [vmem:[%s795_s22 + $0x20] sm:$0xff]   ;;  %v694_v13 = vld [vmem:[%s795_s22 + $0x28] sm:$0xff]   ;;  %s599_s8 = sshll.u32 %s265_s7, 1 }
  0x17   : > { %v601_v11 = vld.sshfl [vmem:[%s248_s29] sm:$0x33 pattern:$0x76325410]  ;;  %v695_v14 = vld [vmem:[%s795_s22 + $0x70] sm:$0xff]   ;;  %v697_v16 = vld [vmem:[%s795_s22 + $0x78] sm:$0xff]   ;;  %s267_s11 = scalar_lea.vmem %s847_s3, %s599_s8 }
  0x18   : > { %v317_v12 = vcombine.high %v601_v11, %v601_v11  ;;  %v696_v15 = vld [vmem:[%s795_s22 + $0x30] sm:$0xff]   ;;  %v698_v17 = vld [vmem:[%s795_s22 + $0x38] sm:$0xff]   ;;  %v600_v19 = vld [vmem:[%s256_s6] ss:$0 sm:$0xff] }
  0x19   : > { %624 = vmatpush3.bf16.msra.mxu0 %v686_v3 }
  0x1a   : > { %625 = vmatprep.subr.bf16.mxu0 %v687_v4  ;;  %448 = vmatprep.mubr.bf16.mxu0 %v317_v12 }
  0x1d   : > { %626 = vmatpush3.bf16.msra.mxu0 %v688_v5 }
  0x1e   : > { %627 = vmatprep.subr.bf16.mxu0 %v689_v6 }
  0x21   : > { %628 = vmatpush3.bf16.msra.mxu0 %v690_v7 }
  0x22   : > { %629 = vmatprep.subr.bf16.mxu0 %v691_v8 }
  0x25   : > { %630 = vmatpush3.bf16.msra.mxu0 %v692_v9 }
  0x26   : > { %631 = vmatprep.subr.bf16.mxu0 %v693_v10 }
  0x29   : > { %632 = vmatpush3.bf16.msra.mxu0 %v694_v13 }
  0x2a   : > { %633 = vmatprep.subr.bf16.mxu0 %v695_v14 }
  0x2d   : > { %634 = vmatpush3.bf16.msra.mxu0 %v696_v15 }
  0x2e   : > { %635 = vmatprep.subr.bf16.mxu0 %v697_v16 }
  0x31   : > { %636 = vmatpush3.bf16.msra.mxu0 %v698_v17 }
  0x34   : > { %449 = vmatmul.mubr.bf16.vlgmr.msra.gmra.mrb[0].mxu0 %v601_v11 }
 0x107   : > { %v637_v18 = vpop.f32.mrb[0].mxu0 }
 0x108   : > { %v638_v20 = vpop.f32.mrb[1].mxu0 }
 0x109   : > { %v639_v21 = vadd.f32 %v638_v20, %v637_v18  ;;  %v640_v22 = vpop.f32.mrb[2].mxu0 }
 0x10a   : > { %v641_v23 = vpop.f32.mrb[3].mxu0 }
 0x10b   : > { %v451_v24 = vadd.f32 %v639_v21, %v600_v19 }
 0x10d   : > { %v456_v25 = vmax.f32 %v451_v24, 0.0 }
 0x10f   : > { %v457_v26 = vpack.c.bf16 %v456_v25, %v456_v25 }
 0x111   : > { %458 = vst [vmem:[%s267_s11] sm:$0x3] %v457_v26 }
 0x112 PF: > { %s13_s16 = sadd.s32 1, %s737_s16   ;;  %s848_s12 = smov %s729_s14 }
 0x113   : > { %p10_p7 = scmp.ge.s32.totalorder %s13_s16, 10   ;;  %s849_s13 = smov %s733_s15 }
 0x114   : > { %s850_s14 = smov %s853_s17  ;;  %s851_s15 = smov %s857_s18 }
 0x115   :  { %12 = sbr.rel (!%p10_p7) target bundleno = 3 (0x3), region = 68 }

// kernel: basicgrap_forward.14
= control target key start
LH: loop header
LB: loop body
LE: loop exit
PB: predicated region body
PF: predicated region fallthrough
CT: control target
= control target key end

     0   :  { %s980_s15 = smov 0   ;;  %s982_s16 = smov 0   ;;  %s1068_s0 = inlined_call_operand.vmem [shape: bf16[4,2,4,128], index: 0, kind: input, shape index: {}]   ;;  %s1069_s1 = inlined_call_operand.vmem [shape: f32[4,2,4,1], index: 1, kind: input, shape index: {}]   ;;  %s1070_s2 = inlined_call_operand.vmem [shape: bf16[4,2,64,128], index: 2, kind: input, shape index: {}]   ;;  %s1071_s3 = inlined_call_operand.vmem [shape: bf16[4,2,64,256], index: 3, kind: input, shape index: {}]   ;;  %s1072_s4 = inlined_call_operand.vmem [shape: f32[2,4,4,256], index: 4, kind: output, shape index: {}]  }
   0x1   :  { %s984_s17 = smov 0   ;;  %s986_s18 = smov 0  }
   0x2   :  { %s988_s19 = smov 0  }
   0x3 LB: > { %s29_s20 = sadd.s32 1, %s940_s17  ;;  %s33_s21 = sadd.s32 1, %s944_s18  ;;  %s948_s19 = sphi %s988_s19, %s14_s19   ;;  %s944_s18 = sphi %s986_s18, %s1076_s18   ;;  %s940_s17 = sphi %s984_s17, %s1075_s17   ;;  %s936_s16 = sphi %s982_s16, %s1074_s16   ;;  %s932_s15 = sphi %s980_s15, %s1073_s15  }
   0x4   : > { %p31_p0 = scmp.ge.s32.totalorder %s29_s20, 4  ;;  %p794_p1 = scmp.ge.s32.totalorder %s948_s19, 1 }
   0x5   : > { %p250_p2 = scmp.lt.s32.totalorder %s948_s19, 9 }
   0x6   : > { %s1078_s20 = smov (%p31_p0, %s29_s20), 0  ;;  %s1080_s21 = smov (!%p31_p0, %s33_s21), %s944_s18 }
   0x7   : > { %p251_p3 = pnand %p794_p1, %p250_p2  ;;  %p35_p4 = scmp.ge.s32.totalorder %s1080_s21, 2 }
   0x8   : > { %p318_p5 = scmp.lt.s32.totalorder (!%p251_p3), %s932_s15, 3  ;;  %p320_p6 = scmp.lt.s32.totalorder (!%p251_p3), %s936_s16, 1  ;;  %v950_v0 = vmov (!%p251_p3), 0.0   ;;  %vm951_vm0 = vmmov (!%p251_p3), 0   ;;  %v952_v1 = vmov (!%p251_p3), 0   ;;  %vm377_vm1 = vcmask (!%p251_p3), 3072  }
   0x9   : > { %s1082_s21 = smov (%p35_p4, %s1080_s21), 0  ;;  %254 = sbr.rel (%p251_p3) target bundleno = 858 (0x35a), region = 36 }
   0xa   : > { %829 = vmatprep.subr.bf16.mxu0 (!%p251_p3), %v950_v0  ;;  %837 = vmatprep.mubr.msk.bf16.mxu0 (!%p251_p3), %vm951_vm0, %v950_v0  ;;  %v953_v8 = vmov (!%p251_p3), -1e+30   ;;  %379 = vst.msk [vmem:[#allocation3] sm:$0xf] (!%p251_p3), %vm377_vm1, %v950_v0  ;;  %vm468_vm2 = vcmask (!%p251_p3), 519168   ;;  %vm553_vm4 = vcmask (!%p251_p3), 523264   ;;  %v499_v47 = vcombine.high (!%p251_p3), %v950_v0, %v950_v0 }
   0xb   : > { %886 = vset.pattern.permute.xlu0 (!%p251_p3), %v952_v1  ;;  %887 = vset.pattern.permute.xlu1 (!%p251_p3), %v952_v1  ;;  %378 = vst.msk [vmem:[#allocation2] sm:$0xf] (!%p251_p3), %vm377_vm1, %v953_v8  ;;  %v954_v58 = vmov (!%p251_p3), 839922192   ;;  %v619_v60 = vlaneseq (!%p251_p3) }
   0xc   : > { %589 = vmatprep.mubr.bf16.mxu1 (!%p251_p3), %v952_v1  ;;  %v617_v59 = vunpack.c.l.s4 (!%p251_p3), %v954_v58 }
   0xd   : > { %v620_v62 = vshrl.u32 (!%p251_p3), %v619_v60, 7 }
   0xe   : > { %v618_v61 = vunpack.c.0.s8 (!%p251_p3), %v617_v59 }
  0x10   : > { %s1084_s15 = smov (!%p318_p5, %s932_s15), 3  ;;  %s1086_s16 = smov (!%p320_p6, %s936_s16), 1  ;;  %v621_v63 = vsub.s32 %v618_v61, %v620_v62 }
  0x11   : > { %s800_s22 = sshll.u32 %s1084_s15, 4  ;;  %s799_s23 = sshll.u32 %s1086_s16, 3  ;;  %v484_v41 = vld [vmem:[#allocation3] sm:$0xf] }
  0x12   : > { %s344_s24 = sadd.s32 %s800_s22, %s799_s23  ;;  %s795_s25 = sshll.u32 %s1084_s15, 1  ;;  %v467_v19 = vld [vmem:[#allocation2] sm:$0xf] }
  0x13   : > { %s801_s26 = sshll.u32 %s344_s24, 2  ;;  %s1022_s30 = sadd.s32 %s799_s23, %s795_s25 }
  0x14   : > { %s346_s29 = scalar_lea.vmem %s1070_s2, %s801_s26  ;;  %s323_s5 = sadd.s32 %s795_s25, %s1086_s16 }
  0x15   : > { %v888_v2 = vld [vmem:[%s346_s29] sm:$0xff]   ;;  %s798_s6 = sshll.u32 %s323_s5, 2  ;;  %v889_v4 = vld [vmem:[%s346_s29 + $0x8] sm:$0xff]   ;;  %v890_v5 = vld [vmem:[%s346_s29 + $0x10] sm:$0xff]   ;;  %s796_s10 = sshll.u32 %s323_s5, 1 }
  0x16   : > { %830 = vmatpush3.bf16.xpose.msra.mxu0 %v888_v2  ;;  %s333_s9 = scalar_lea.vmem %s1069_s1, %s798_s6  ;;  %v891_v6 = vld [vmem:[%s346_s29 + $0x18] sm:$0xff]   ;;  %s325_s13 = scalar_lea.vmem %s1068_s0, %s796_s10 }
  0x17   : > { %831 = vmatprep.subr.bf16.mxu0 %v950_v0  ;;  %v454_v3 = vld [vmem:[%s333_s9] sm:$0xf]  ;;  %s802_s14 = sshll.u32 %s1086_s16, 4  ;;  %s803_s22 = sshll.u32 %s1084_s15, 5 }
  0x18   : > { %457 = vperm.xlu0 %886, %v454_v3   ;;  %v381_v7 = vld [vmem:[%s325_s13] sm:$0x3]  ;;  %s359_s23 = sadd.s32 %s803_s22, %s802_s14  ;;  %s807_s15 = sshll.u32 %s1022_s30, 2 }
  0x19   : > { %s804_s24 = sshll.u32 %s359_s23, 2  ;;  %s371_s29 = scalar_lea.vmem %s1072_s4, %s807_s15 }
  0x1a   : > { %s361_s27 = scalar_lea.vmem %s1071_s3, %s804_s24 }
  0x1b   : > { %v892_v23 = vld [vmem:[%s361_s27 + $0x4] ss:$8 sps:$4 sm:$0xff]   ;;  %v894_v25 = vld [vmem:[%s361_s27] ss:$8 sps:$4 sm:$0xff]   ;;  %v895_v26 = vld [vmem:[%s361_s27 + $0x14] ss:$8 sps:$4 sm:$0xff]  }
  0x1c   : > { %557 = vmatprep.subr.bf16.mxu1 %v892_v23  ;;  %v897_v27 = vld [vmem:[%s361_s27 + $0x10] ss:$8 sps:$4 sm:$0xff]   ;;  %v898_v28 = vld [vmem:[%s361_s27 + $0x24] ss:$8 sps:$4 sm:$0xff]   ;;  %v900_v29 = vld [vmem:[%s361_s27 + $0x20] ss:$8 sps:$4 sm:$0xff]  }
  0x1d   : > { %558 = vmatpush1.bf16.msra.mxu1 %v894_v25  ;;  %v901_v30 = vld [vmem:[%s361_s27 + $0x34] ss:$8 sps:$4 sm:$0xff]   ;;  %v903_v32 = vld [vmem:[%s361_s27 + $0x30] ss:$8 sps:$4 sm:$0xff]  }
  0x1e   : > { %832 = vmatpush3.bf16.xpose.msra.mxu0 %v889_v4  ;;  %559 = vmatprep.subr.bf16.mxu1 %v895_v26 }
  0x1f   : > { %833 = vmatprep.subr.bf16.mxu0 %v950_v0 }
  0x21   : > { %560 = vmatpush1.bf16.msra.mxu1 %v897_v27 }
  0x22   : > { %561 = vmatprep.subr.bf16.mxu1 %v898_v28 }
  0x25   : > { %562 = vmatpush1.bf16.msra.mxu1 %v900_v29 }
  0x26   : > { %834 = vmatpush3.bf16.xpose.msra.mxu0 %v890_v5  ;;  %563 = vmatprep.subr.bf16.mxu1 %v901_v30 }
  0x27   : > { %835 = vmatprep.subr.bf16.mxu0 %v950_v0 }
  0x29   : > { %564 = vmatpush1.bf16.msra.mxu1 %v903_v32 }
  0x2e   : > { %836 = vmatpush3.bf16.xpose.msra.mxu0 %v891_v6 }
  0x35   : > { %838 = vmatmul.mubr.bf16.vlgmr.msra.gmra.mrb[0].mxu0 %v381_v7 }
  0x97   : > { %v458_v9 = vpop.permute.xlu0 %457 }
 0x108   : > { %v448_v10 = vpop.f32.mrb[0].mxu0 }
 0x109   : > { %v460_v11 = vsub.f32 %v448_v10, %v458_v9  ;;  %v839_v12 = vpop.f32.mrb[1].mxu0 }
 0x10a   : > { %v451_v13 = vpop.f32.mrb[2].mxu0 }
 0x10b   : > { %v461_v14 = vmax.f32 %v460_v11, 0.0  ;;  %v840_v15 = vpop.f32.mrb[3].mxu0 }
 0x10d   : > { %v462_v16 = vmul.f32 %v461_v14, %v448_v10  ;;  %vm464_vm3 = vcmp.gt.f32.partialorder %v461_v14, 0.0 }
 0x10e   : > { %v812_v37 = vsel %vm464_vm3, 1.0, %v950_v0 }
 0x10f   : > { %v463_v17 = vmul.f32 10.0, %v462_v16 }
 0x111   : > { %v469_v18 = vsel %vm468_vm2, %v463_v17, -inf }
 0x112   : > { %470 = vmax.xlane.f32.xlu0 %v469_v18 }
 0x19f   : > { %v471_v20 = vpop.xlane.xlu0 %470 }
 0x1a0   : > { %v472_v21 = vmax.f32 %v467_v19, %v471_v20 }
 0x1a2   : > { %v473_v22 = vsub.f32 %v467_v19, %v472_v21  ;;  %605 = vst.msk [vmem:[#allocation2] sm:$0xf] %vm377_vm1, %v472_v21  ;;  %478 = vperm.xlu1 %887, %v472_v21  }
 0x1a4   : > { %v474_v24 = vmul.f32 1.442695, %v473_v22 }
 0x1a6   : > { %904 = vpow2.f32 %v474_v24 }
 0x1b0   : > { %v905_v31 = vpop.eup %904 }
 0x1b1   : > { %495 = vperm.xlu0 %886, %v905_v31   ;;  %v485_v42 = vmul.f32 %v905_v31, %v484_v41 }
 0x221   : > { %v479_v33 = vpop.permute.xlu1 %478 }
 0x222   : > { %v481_v34 = vsub.f32 %v463_v17, %v479_v33 }
 0x224   : > { %v482_v35 = vmul.f32 1.442695, %v481_v34 }
 0x226   : > { %906 = vpow2.f32 %v482_v35 }
 0x230   : > { %v907_v36 = vpop.eup %906  ;;  %v496_v48 = vpop.permute.xlu0 %495 }
 0x231   : > { %v486_v38 = vsel %vm468_vm2, %v907_v36, 0.0  ;;  %v503_v39 = vmul.f32 %v907_v36, %v812_v37  ;;  %v501_v49 = vmul.f32 0.0, %v496_v48  ;;  %v502_v50 = vmul.f32 %v499_v47, %v496_v48 }
 0x232   : > { %487 = vadd.xlane.f32.xlu1 %v486_v38 }
 0x233   : > { %v504_v40 = vpack.c.bf16 %v503_v39, %v503_v39 }
 0x235   : > { %821 = vmatmul.mubr.msk.bf16.vlgmr.msra.gmra.mrb[0].mxu1 %vm553_vm4, %v504_v40 }
 0x2bf   : > { %v488_v43 = vpop.xlane.xlu1 %487 }
 0x2c0   : > { %v489_v44 = vadd.f32 %v488_v43, %v485_v42 }
 0x2c2   : > { %491 = vst.msk [vmem:[#allocation3] sm:$0xf] %vm377_vm1, %v489_v44 }
 0x2c9   : > { %v610_v45 = vld [vmem:[#allocation3] sm:$0xf] }
 0x2ca   : > { %908 = vrcp.f32 %v610_v45 }
 0x2d4   : > { %v909_v46 = vpop.eup %908 }
 0x2d5   : > { %614 = vperm.xlu1 %887, %v909_v46  }
 0x308   : > { %v591_v51 = vpop.f32.mrb[0].mxu1 }
 0x309   : > { %v598_v52 = vadd.f32 %v591_v51, %v501_v49  ;;  %v593_v53 = vpop.f32.mrb[1].mxu1 }
 0x30a   : > { %v599_v54 = vadd.f32 %v593_v53, %v502_v50  ;;  %v595_v55 = vpop.f32.mrb[2].mxu1 }
 0x30b   : > { %v596_v56 = vpop.f32.mrb[3].mxu1 }
 0x30c   : > { %v602_v57 = vcombine.low %v598_v52, %v599_v54 }
 0x354   : > { %v615_v1 = vpop.permute.xlu1 %614 }
 0x355   : > { %v622_v0 = vrot.slane %v615_v1, %v621_v63 }
 0x357   : > { %v624_v2 = vmul.f32 %v622_v0, %v602_v57 }
 0x359   : > { %625 = vst [vmem:[%s371_s29] sm:$0xff] %v624_v2 }
 0x35a PF: > { %s14_s19 = sadd.s32 1, %s948_s19   ;;  %s1073_s15 = smov %s940_s17 }
 0x35b   : > { %p11_p7 = scmp.ge.s32.totalorder %s14_s19, 10   ;;  %s1074_s16 = smov %s944_s18 }
 0x35c   : > { %s1075_s17 = smov %s1078_s20  ;;  %s1076_s18 = smov %s1082_s21 }
 0x35d   :  { %13 = sbr.rel (!%p11_p7) target bundleno = 3 (0x3), region = 83 }

// kernel: basicgrap_forward.16
= control target key start
LH: loop header
LB: loop body
LE: loop exit
PB: predicated region body
PF: predicated region fallthrough
CT: control target
= control target key end

     0   :  { %s454_s12 = smov 0   ;;  %s456_s13 = smov 0   ;;  %s493_s0 = inlined_call_operand.vmem [shape: bf16[2,16,256], index: 0, kind: input, shape index: {}]   ;;  %s494_s1 = inlined_call_operand.vmem [shape: bf16[8,16], index: 1, kind: input, shape index: {}]   ;;  %s495_s2 = inlined_call_operand.vmem [shape: f32[8,1], index: 2, kind: input, shape index: {}]   ;;  %s496_s3 = inlined_call_operand.vmem [shape: f32[2,8,256], index: 3, kind: output, shape index: {}]  }
   0x1   :  { %s458_s14 = smov 0  }
   0x2 LB: > { %s25_s15 = sadd.s32 1, %s427_s13  ;;  %p368_p0 = scmp.ge.s32.totalorder %s431_s14, 1  ;;  %s431_s14 = sphi %s458_s14, %s13_s14   ;;  %s427_s13 = sphi %s456_s13, %s498_s13   ;;  %s423_s12 = sphi %s454_s12, %s497_s12  }
   0x3   : > { %p27_p1 = scmp.ge.s32.totalorder %s25_s15, 2  ;;  %p158_p2 = scmp.lt.s32.totalorder %s431_s14, 3 }
   0x5   : > { %s500_s15 = smov (%p27_p1, %s25_s15), 0  ;;  %p159_p3 = pnand %p368_p0, %p158_p2 }
   0x6   : > { %p191_p4 = scmp.lt.s32.totalorder (!%p159_p3), %s423_s12, 1  ;;  %v214_v0 = vld [vmem:[%s495_s2] sm:$0xff] (!%p159_p3)  ;;  %v433_v1 = vmov (!%p159_p3), 0   ;;  %vm230_vm0 = vcmask (!%p159_p3), 130048  }
   0x7   : > { %162 = sbr.rel (%p159_p3) target bundleno = 238 (0xee), region = 32  ;;  %266 = vmatprep.mubr.bf16.mxu0 (!%p159_p3), %v433_v1  ;;  %405 = vset.pattern.permute.xlu0 (!%p159_p3), %v433_v1  ;;  %v211_v4 = vld [vmem:[%s494_s1] sm:$0xf] (!%p159_p3) }
   0x8   : > { %217 = vperm.xlu0 (!%p159_p3), %405, %v214_v0  }
   0xe   : > { %s502_s12 = smov (!%p191_p4, %s423_s12), 1 }
   0xf   : > { %s378_s18 = sshll.u32 %s502_s12, 4 }
  0x10   : > { %s198_s21 = scalar_lea.vmem %s493_s0, %s378_s18  ;;  %s208_s26 = scalar_lea.vmem %s496_s3, %s378_s18 }
  0x11   : > { %v406_v2 = vld [vmem:[%s198_s21 + $0x4] ss:$8 sps:$4 sm:$0xff]   ;;  %v408_v3 = vld [vmem:[%s198_s21] ss:$8 sps:$4 sm:$0xff]  }
  0x12   : > { %234 = vmatprep.subr.bf16.mxu0 %v406_v2 }
  0x13   : > { %235 = vmatpush1.bf16.msra.mxu0 %v408_v3 }
  0x16   : > { %375 = vmatmul.mubr.msk.bf16.vlgmr.msra.gmra.mrb[0].mxu0 %vm230_vm0, %v211_v4 }
  0x87   : > { %v218_v5 = vpop.permute.xlu0 %217 }
  0xe9   : > { %v268_v6 = vpop.f32.mrb[0].mxu0 }
  0xea   : > { %v269_v7 = vadd.f32 %v268_v6, %v218_v5  ;;  %v270_v8 = vpop.f32.mrb[1].mxu0 }
  0xeb   : > { %v271_v9 = vadd.f32 %v270_v8, %v218_v5  ;;  %v272_v10 = vpop.f32.mrb[2].mxu0 }
  0xec   : > { %275 = vst [vmem:[%s208_s26] sm:$0xff] %v269_v7  ;;  %v273_v11 = vpop.f32.mrb[3].mxu0 }
  0xed   : > { %276 = vst [vmem:[%s208_s26 + $0x8] sm:$0xff] %v271_v9 }
  0xee PF: > { %s13_s14 = sadd.s32 1, %s431_s14   ;;  %s497_s12 = smov %s427_s13 }
  0xef   : > { %p10_p5 = scmp.ge.s32.totalorder %s13_s14, 4   ;;  %s498_s13 = smov %s500_s15 }
  0xf1   :  { %12 = sbr.rel (!%p10_p5) target bundleno = 2 (0x2), region = 62 }

// kernel: basicgrap_forward.17
= control target key start
LH: loop header
LB: loop body
LE: loop exit
PB: predicated region body
PF: predicated region fallthrough
CT: control target
= control target key end

     0   :  { %s548_s15 = smov 0   ;;  %s550_s16 = smov 0   ;;  %s590_s0 = inlined_call_operand.vmem [shape: bf16[2,8,256], index: 0, kind: input, shape index: {}]   ;;  %s591_s1 = inlined_call_operand.vmem [shape: bf16[8,8], index: 1, kind: input, shape index: {}]   ;;  %s592_s2 = inlined_call_operand.vmem [shape: f32[8,1], index: 2, kind: input, shape index: {}]   ;;  %s593_s3 = inlined_call_operand.vmem [shape: f32[2,8,256], index: 3, kind: input, shape index: {}]   ;;  %s594_s4 = inlined_call_operand.vmem [shape: f32[2,8,256], index: 4, kind: output, shape index: {}]  }
   0x1   :  { %s552_s17 = smov 0  }
   0x2 LB: > { %s26_s18 = sadd.s32 1, %s516_s16  ;;  %p454_p0 = scmp.ge.s32.totalorder %s520_s17, 1  ;;  %s520_s17 = sphi %s552_s17, %s14_s17   ;;  %s516_s16 = sphi %s550_s16, %s596_s16   ;;  %s512_s15 = sphi %s548_s15, %s595_s15  }
   0x3   : > { %p28_p1 = scmp.ge.s32.totalorder %s26_s18, 2  ;;  %p200_p2 = scmp.lt.s32.totalorder %s520_s17, 3 }
   0x5   : > { %s598_s18 = smov (%p28_p1, %s26_s18), 0  ;;  %p201_p3 = pnand %p454_p0, %p200_p2 }
   0x6   : > { %p244_p4 = scmp.lt.s32.totalorder (!%p201_p3), %s512_s15, 1  ;;  %v522_v0 = vmov (!%p201_p3), 0   ;;  %v276_v1 = vld [vmem:[%s592_s2] sm:$0xff] (!%p201_p3)  ;;  %vm291_vm0 = vcmask (!%p201_p3), 1043456   ;;  %vm287_vm1 = vcmask (!%p201_p3), 64512  }
   0x7   : > { %204 = sbr.rel (%p201_p3) target bundleno = 242 (0xf2), region = 36  ;;  %330 = vmatprep.mubr.bf16.mxu0 (!%p201_p3), %v522_v0  ;;  %495 = vset.pattern.permute.xlu0 (!%p201_p3), %v522_v0  ;;  %v274_v6 = vld [vmem:[%s591_s1] sm:$0xf] (!%p201_p3) }
   0x8   : > { %279 = vperm.xlu0 (!%p201_p3), %495, %v276_v1  }
   0xe   : > { %s600_s15 = smov (!%p244_p4, %s512_s15), 1 }
   0xf   : > { %s467_s21 = sshll.u32 %s600_s15, 3  ;;  %s468_s27 = sshll.u32 %s600_s15, 4 }
  0x10   : > { %s251_s24 = scalar_lea.vmem %s590_s0, %s467_s21  ;;  %s261_s30 = scalar_lea.vmem %s593_s3, %s468_s27 }
  0x11   : > { %v275_v2 = vld [vmem:[%s251_s24] sm:$0xff]  ;;  %v340_v12 = vld [vmem:[%s261_s30 + $0x8] sm:$0xff]  ;;  %s271_s7 = scalar_lea.vmem %s594_s4, %s468_s27 }
  0x12   : > { %v462_v3 = vcombine.high %v275_v2, %v275_v2  ;;  %v461_v4 = vcombine.low %v275_v2, %v275_v2  ;;  %v339_v9 = vld [vmem:[%s261_s30] sm:$0xff] }
  0x14   : > { %463 = vmatprep.subr.msk.bf16.mxu0 %vm291_vm0, %v462_v3  ;;  %v293_v5 = vsel %vm291_vm0, %v461_v4, 0 }
  0x15   : > { %299 = vmatpush1.bf16.msra.mxu0 %v293_v5 }
  0x18   : > { %464 = vmatmul.mubr.msk.bf16.vlgmr.msra.gmra.mrb[0].mxu0 %vm287_vm1, %v274_v6 }
  0x87   : > { %v280_v7 = vpop.permute.xlu0 %279 }
  0xeb   : > { %v332_v8 = vpop.f32.mrb[0].mxu0 }
  0xec   : > { %v333_v10 = vadd.f32 %v332_v8, %v280_v7  ;;  %v334_v11 = vpop.f32.mrb[1].mxu0 }
  0xed   : > { %v335_v13 = vadd.f32 %v334_v11, %v280_v7  ;;  %v336_v14 = vpop.f32.mrb[2].mxu0 }
  0xee   : > { %v341_v15 = vadd.f32 %v339_v9, %v333_v10  ;;  %v337_v16 = vpop.f32.mrb[3].mxu0 }
  0xef   : > { %v342_v17 = vadd.f32 %v340_v12, %v335_v13 }
  0xf0   : > { %343 = vst [vmem:[%s271_s7] sm:$0xff] %v341_v15 }
  0xf1   : > { %344 = vst [vmem:[%s271_s7 + $0x8] sm:$0xff] %v342_v17 }
  0xf2 PF: > { %s14_s17 = sadd.s32 1, %s520_s17   ;;  %s595_s15 = smov %s516_s16 }
  0xf3   : > { %p11_p5 = scmp.ge.s32.totalorder %s14_s17, 4   ;;  %s596_s16 = smov %s598_s18 }
  0xf5   :  { %13 = sbr.rel (!%p11_p5) target bundleno = 2 (0x2), region = 69 }

</bundles_post_ra>
